<compile_context>
chip_gen: v6e
topology: v6e:2x2x1
jax: 0.10.0
libtpu: 0.0.40
codegen_flags: <defaults>
</compile_context>

<pallas_src>
import functools

import jax
import jax.numpy as jnp
from jax.experimental import pallas as pl
from jax.experimental.pallas import tpu as pltpu


# Static indices into the packed slabs (D x D weight stack / bias stack / BN).
(W_BLK_Q, W_BLK_K, W_BLK_V, W_BLK_O, W_BLK_L1, W_BLK_L2,
 W_MHA_Q, W_MHA_K, W_MHA_V, W_MHA_O, W_L2) = range(11)
(B_LIN1, B_BLK_Q, B_BLK_K, B_BLK_V, B_BLK_O, B_BLK_L1, B_BLK_L2,
 B_MHA_Q, B_MHA_K, B_MHA_V, B_MHA_O, B_L2) = range(12)
# BatchNorm stack columns: [n1_gamma, n1_beta, n2_gamma, n2_beta]


# ----------------------------- in-kernel helpers -----------------------------

def _mm(x_f32, w_bf16, b_f32=None):
    """Flat 2D MXU dot: (N, Din) @ (Din, Dout) [+ bias]. bf16 operands, f32 acc."""
    y = jnp.dot(x_f32.astype(jnp.bfloat16), w_bf16,
                preferred_element_type=jnp.float32)
    if b_f32 is not None:
        y = y + b_f32
    return y


def _softmax_last(s):
    m = jnp.max(s, axis=-1, keepdims=True)
    e = jnp.exp(s - m)
    return e * pl.reciprocal(jnp.sum(e, axis=-1, keepdims=True), approx=True)


def _mha(x2d, wq, wk, wv, wo, bq, bk, bv, bo, *, B, L, num_heads):
    """nn.MultiheadAttention forward (batch_first) with q = k = v = x.

    x2d: (B*L, D) f32.  Returns (B*L, D) f32.
    """
    D = wq.shape[-1]
    dh = D // num_heads
    scale = 1.0 / float(dh) ** 0.5

    # Three separate lane-aligned projections (no fused-qkv output slicing).
    q = ((_mm(x2d, wq, bq) * scale).reshape(B, L, D)).astype(jnp.bfloat16)
    k = (_mm(x2d, wk, bk).reshape(B, L, D)).astype(jnp.bfloat16)
    v = (_mm(x2d, wv, bv).reshape(B, L, D)).astype(jnp.bfloat16)

    heads = []
    for h in range(num_heads):
        lo = h * dh
        qh = q[:, :, lo:lo + dh]
        kh = k[:, :, lo:lo + dh]
        vh = v[:, :, lo:lo + dh]
        s = jnp.einsum('bqd,bkd->bqk', qh, kh,
                       preferred_element_type=jnp.float32)          # (B, L, L)
        p = _softmax_last(s).astype(jnp.bfloat16)
        heads.append(jnp.einsum('bqk,bkd->bqd', p, vh,
                                preferred_element_type=jnp.float32))  # (B, L, dh)

    # Concatenate heads and do a single output-projection dot (no serialized
    # per-head accumulation chain, out-proj weight consumed whole in bf16).
    o = jnp.concatenate(heads, axis=-1).reshape(B * L, D)
    return _mm(o, wo, bo)


def _batchnorm1d(z2d, gamma, beta, *, B, L, eps=1e-5):
    """BatchNorm1d(num_features=L), training-mode batch statistics, all f32."""
    D = z2d.shape[-1]
    z = z2d.reshape(B, L, D)
    n = float(B * D)
    mean = jnp.sum(jnp.sum(z, axis=2, keepdims=True), axis=0, keepdims=True) / n
    d = z - mean
    var = jnp.sum(jnp.sum(d * d, axis=2, keepdims=True), axis=0, keepdims=True) / n
    y = d * jax.lax.rsqrt(var + eps) * gamma[None] + beta[None]
    return y.reshape(B * L, D)


# --------------------------------- kernel ------------------------------------

def encoder_kernel(x_ref, w1_ref, wstk_ref, ow_ref, bstk_ref, ob_ref, bn_ref,
                   y_ref, *, num_heads):
    B, L, Din = x_ref.shape
    x2d = x_ref[...].astype(jnp.float32).reshape(B * L, Din)

    bstk = bstk_ref[...]                                  # (12, D) f32
    bn = bn_ref[...]                                      # (L, 4)  f32

    def bias(i):                                          # static slice -> (1, D)
        return bstk[i:i + 1, :]

    def wmat(i):                                          # static index -> (D, D) bf16
        return wstk_ref[i]

    # self.linear : input_dim -> d_attn
    h = _mm(x2d, w1_ref[...], bias(B_LIN1))

    # ---- AttentionBlock ----
    attn = _mha(h, wmat(W_BLK_Q), wmat(W_BLK_K), wmat(W_BLK_V), wmat(W_BLK_O),
                bias(B_BLK_Q), bias(B_BLK_K), bias(B_BLK_V), bias(B_BLK_O),
                B=B, L=L, num_heads=num_heads)
    a = _batchnorm1d(h + attn, bn[:, 0:1], bn[:, 1:2], B=B, L=L)      # norm
    ff = jnp.maximum(_mm(a, wmat(W_BLK_L1), bias(B_BLK_L1)), 0.0)     # ReLU (f32)
    ff = _mm(ff, wmat(W_BLK_L2), bias(B_BLK_L2))
    a = _batchnorm1d(a + ff, bn[:, 2:3], bn[:, 3:4], B=B, L=L)        # norm2

    # ---- cross attention ----
    # Computed over all L query rows; softmax is row-wise so the last
    # `output_len` rows equal the queries-sliced-first result.  The query slice
    # happens outside the kernel at the lane-dense output.
    c = _mha(a, wmat(W_MHA_Q), wmat(W_MHA_K), wmat(W_MHA_V), wmat(W_MHA_O),
             bias(B_MHA_Q), bias(B_MHA_K), bias(B_MHA_V), bias(B_MHA_O),
             B=B, L=L, num_heads=num_heads)

    # ---- output head (zero-padded to a lane-dense width in prepare_params) ----
    z = jnp.maximum(_mm(c, wmat(W_L2), bias(B_L2)), 0.0)
    out = _mm(z, ow_ref[...], ob_ref[...])                # (B*L, out_pad)
    y_ref[...] = out.astype(y_ref.dtype)


# ----------------------- one-time parameter preparation ----------------------

def prepare_params(params):
    """Pack raw params into kernel slabs (run ONCE, outside the forward path)."""
    D = params['blk_out_w'].shape[0]
    h1 = params['blk_l1_w'].shape[1]
    h2 = params['l2_w'].shape[1]
    # TODO(synk): generalize the weight slab layout to d_attn != hidden_dim(2).
    assert h1 == D and h2 == D, "packed slab assumes d_attn == hidden_dim == hidden_dim2"

    out_dim = params['out_b'].shape[-1]
    out_pad = pl.cdiv(out_dim, 128) * 128                 # lane-dense output width

    def split3(w):                                        # (r, 3D) -> 3 x (r, D)
        return w[:, :D], w[:, D:2 * D], w[:, 2 * D:3 * D]

    blk_q, blk_k, blk_v = split3(params['blk_in_w'])
    mha_q, mha_k, mha_v = split3(params['mha_in_w'])
    blk_qb, blk_kb, blk_vb = split3(params['blk_in_b'])
    mha_qb, mha_kb, mha_vb = split3(params['mha_in_b'])

    wstk = jnp.stack(
        [blk_q, blk_k, blk_v, params['blk_out_w'],
         params['blk_l1_w'], params['blk_l2_w'],
         mha_q, mha_k, mha_v, params['mha_out_w'],
         params['l2_w']], axis=0).astype(jnp.bfloat16)                 # (11, D, D)

    bstk = jnp.concatenate(
        [params['b1'], blk_qb, blk_kb, blk_vb, params['blk_out_b'],
         params['blk_l1_b'], params['blk_l2_b'],
         mha_qb, mha_kb, mha_vb, params['mha_out_b'],
         params['l2_b']], axis=0).astype(jnp.float32)                  # (12, D)

    bn = jnp.concatenate(
        [params['n1_g'], params['n1_b'], params['n2_g'], params['n2_b']],
        axis=1).astype(jnp.float32)                                    # (L, 4)

    out_w = jnp.zeros((params['out_w'].shape[0], out_pad), jnp.float32
                      ).at[:, :out_dim].set(params['out_w']).astype(jnp.bfloat16)
    out_b = jnp.zeros((1, out_pad), jnp.float32).at[:, :out_dim].set(params['out_b'])

    return {
        'w1': params['w1'].astype(jnp.bfloat16),
        'wstk': wstk, 'out_w': out_w,
        'bstk': bstk, 'out_b': out_b, 'bn': bn,
        'out_dim': int(out_dim),
    }


# --------------------------------- forward -----------------------------------

def attention_encoder_forward(x, packed, *, num_heads, output_len):
    B, L, _ = x.shape
    out_dim = packed['out_dim']
    out_pad = packed['out_w'].shape[-1]

    args = (x, packed['w1'], packed['wstk'], packed['out_w'],
            packed['bstk'], packed['out_b'], packed['bn'])

    # VMEM budget from actual operand/output bytes (everything resident, no grid).
    nbytes = sum(int(a.nbytes) for a in args) + B * L * out_pad * 4
    vmem_limit = int(min(64 << 20, max(16 << 20, 8 * nbytes)))

    vmem = pl.BlockSpec(memory_space=pltpu.MemorySpace.VMEM)
    y2d = pl.pallas_call(
        functools.partial(encoder_kernel, num_heads=num_heads),
        out_shape=jax.ShapeDtypeStruct((B * L, out_pad), jnp.float32),
        in_specs=[vmem] * len(args),
        out_specs=vmem,
        compiler_params=pltpu.CompilerParams(vmem_limit_bytes=vmem_limit),
    )(*args)
    # Query slice (last output_len rows) and lane un-padding happen here.
    return y2d.reshape(B, L, out_pad)[:, L - output_len:, :out_dim]


# ------------------------- deterministic parameter init ----------------------

def init_params(key, inputs, attn_dims, hidden_dims, outputs):
    input_len, input_dim = inputs
    d_attn, _n_heads = attn_dims
    h1, h2 = hidden_dims
    _out_len, out_dim = outputs

    keys = iter(jax.random.split(key, 32))

    def w(shape, scale=0.1):
        return (scale * jax.random.normal(next(keys), shape)).astype(jnp.float32)

    return {
        # encoder.linear : input_dim -> d_attn
        'w1': w((input_dim, d_attn)), 'b1': w((1, d_attn)),
        # attn_block.mha (in_proj stored pre-transposed as [Wq | Wk | Wv])
        'blk_in_w': w((d_attn, 3 * d_attn)), 'blk_in_b': w((1, 3 * d_attn)),
        'blk_out_w': w((d_attn, d_attn)), 'blk_out_b': w((1, d_attn)),
        # attn_block.norm / norm2 (BatchNorm1d over input_len)
        'n1_g': jnp.ones((input_len, 1), jnp.float32),
        'n1_b': jnp.zeros((input_len, 1), jnp.float32),
        'n2_g': jnp.ones((input_len, 1), jnp.float32),
        'n2_b': jnp.zeros((input_len, 1), jnp.float32),
        # attn_block.linear / linear2
        'blk_l1_w': w((d_attn, h1)), 'blk_l1_b': w((1, h1)),
        'blk_l2_w': w((h1, d_attn)), 'blk_l2_b': w((1, d_attn)),
        # encoder.mha
        'mha_in_w': w((d_attn, 3 * d_attn)), 'mha_in_b': w((1, 3 * d_attn)),
        'mha_out_w': w((d_attn, d_attn)), 'mha_out_b': w((1, d_attn)),
        # encoder.linear2 : d_attn -> h2
        'l2_w': w((d_attn, h2)), 'l2_b': w((1, h2)),
        # encoder.output : h2 -> out_dim
        'out_w': w((h2, out_dim)), 'out_b': w((1, out_dim)),
    }


# ----------------------------------- main -------------------------------------

if __name__ == "__main__":
    inputs = (8, 16)        # (input_len, input_dim)
    attn_dims = (32, 4)     # (attn_dims, attn_heads)
    hidden_dims = (32, 32)  # (hidden_dim, hidden_dim2)
    outputs = (4, 8)        # (output_len, output_dim)
    B = 2

    key = jax.random.PRNGKey(0)
    kx, kp = jax.random.split(key)
    x = jax.random.normal(kx, (B, inputs[0], inputs[1]), dtype=jnp.float32)
    params = init_params(kp, inputs, attn_dims, hidden_dims, outputs)

    # One-time parameter packing / casting — off the forward path.
    packed = prepare_params(params)

    y = attention_encoder_forward(x, packed,
                                  num_heads=attn_dims[1],
                                  output_len=outputs[0])
    y = jax.block_until_ready(y)
    assert y.shape == (B, outputs[0], outputs[1]), y.shape
    assert bool(jnp.all(jnp.isfinite(y)))
    print("KERNEL_OK")
</pallas_src>

<mosaic_0001>
module attributes {stable_mosaic.version = 11 : i64} {
  func.func @encoder_kernel(%arg0: memref<2x8x16xf32, #tpu.memory_space<vmem>>, %arg1: memref<16x32xbf16, #tpu.memory_space<vmem>>, %arg2: memref<11x32x32xbf16, #tpu.memory_space<vmem>>, %arg3: memref<32x128xbf16, #tpu.memory_space<vmem>>, %arg4: memref<12x32xf32, #tpu.memory_space<vmem>>, %arg5: memref<1x128xf32, #tpu.memory_space<vmem>>, %arg6: memref<8x4xf32, #tpu.memory_space<vmem>>, %arg7: memref<16x128xf32, #tpu.memory_space<vmem>>) attributes {dimension_semantics = [], scalar_prefetch = 0 : i64, scratch_operands = 0 : i64, tpu.core_type = #tpu.core_type<tc>} {
    %c0 = arith.constant 0 : index
    %c0_0 = arith.constant 0 : index
    %c0_1 = arith.constant 0 : index
    %0 = vector.load %arg0[%c0, %c0_0, %c0_1] : memref<2x8x16xf32, #tpu.memory_space<vmem>>, vector<2x8x16xf32>
    %1 = vector.shape_cast %0 : vector<2x8x16xf32> to vector<16x16xf32>
    %c0_2 = arith.constant 0 : index
    %c0_3 = arith.constant 0 : index
    %2 = vector.load %arg4[%c0_2, %c0_3] : memref<12x32xf32, #tpu.memory_space<vmem>>, vector<12x32xf32>
    %c0_4 = arith.constant 0 : index
    %c0_5 = arith.constant 0 : index
    %3 = vector.load %arg6[%c0_4, %c0_5] : memref<8x4xf32, #tpu.memory_space<vmem>>, vector<8x4xf32>
    %c0_6 = arith.constant 0 : index
    %c0_7 = arith.constant 0 : index
    %4 = vector.load %arg1[%c0_6, %c0_7] : memref<16x32xbf16, #tpu.memory_space<vmem>>, vector<16x32xbf16>
    %5 = vector.extract_strided_slice %2 {offsets = [0, 0], sizes = [1, 32], strides = [1, 1]} : vector<12x32xf32> to vector<1x32xf32>
    %6 = arith.truncf %1 : vector<16x16xf32> to vector<16x16xbf16>
    %cst = arith.constant dense<0.000000e+00> : vector<16x32xf32>
    %7 = tpu.matmul %6, %4, %cst {dimension_numbers = #tpu.dot_dimension_numbers<[1], [0], [0], [1], [0, 0, 1, 1], [], []>} : vector<16x16xbf16>, vector<16x32xbf16>, vector<16x32xf32> -> vector<16x32xf32>
    %8 = vector.broadcast %5 : vector<1x32xf32> to vector<16x32xf32>
    %9 = arith.addf %7, %8 : vector<16x32xf32>
    %c0_8 = arith.constant 0 : index
    %c0_9 = arith.constant 0 : index
    %c0_10 = arith.constant 0 : index
    %10 = vector.load %arg2[%c0_8, %c0_9, %c0_10] : memref<11x32x32xbf16, #tpu.memory_space<vmem>>, vector<1x32x32xbf16>
    %11 = vector.shape_cast %10 : vector<1x32x32xbf16> to vector<32x32xbf16>
    %c1 = arith.constant 1 : index
    %c0_11 = arith.constant 0 : index
    %c0_12 = arith.constant 0 : index
    %12 = vector.load %arg2[%c1, %c0_11, %c0_12] : memref<11x32x32xbf16, #tpu.memory_space<vmem>>, vector<1x32x32xbf16>
    %13 = vector.shape_cast %12 : vector<1x32x32xbf16> to vector<32x32xbf16>
    %c2 = arith.constant 2 : index
    %c0_13 = arith.constant 0 : index
    %c0_14 = arith.constant 0 : index
    %14 = vector.load %arg2[%c2, %c0_13, %c0_14] : memref<11x32x32xbf16, #tpu.memory_space<vmem>>, vector<1x32x32xbf16>
    %15 = vector.shape_cast %14 : vector<1x32x32xbf16> to vector<32x32xbf16>
    %c3 = arith.constant 3 : index
    %c0_15 = arith.constant 0 : index
    %c0_16 = arith.constant 0 : index
    %16 = vector.load %arg2[%c3, %c0_15, %c0_16] : memref<11x32x32xbf16, #tpu.memory_space<vmem>>, vector<1x32x32xbf16>
    %17 = vector.shape_cast %16 : vector<1x32x32xbf16> to vector<32x32xbf16>
    %18 = vector.extract_strided_slice %2 {offsets = [1, 0], sizes = [1, 32], strides = [1, 1]} : vector<12x32xf32> to vector<1x32xf32>
    %19 = vector.extract_strided_slice %2 {offsets = [2, 0], sizes = [1, 32], strides = [1, 1]} : vector<12x32xf32> to vector<1x32xf32>
    %20 = vector.extract_strided_slice %2 {offsets = [3, 0], sizes = [1, 32], strides = [1, 1]} : vector<12x32xf32> to vector<1x32xf32>
    %21 = vector.extract_strided_slice %2 {offsets = [4, 0], sizes = [1, 32], strides = [1, 1]} : vector<12x32xf32> to vector<1x32xf32>
    %22 = arith.truncf %9 : vector<16x32xf32> to vector<16x32xbf16>
    %cst_17 = arith.constant dense<0.000000e+00> : vector<16x32xf32>
    %23 = tpu.matmul %22, %11, %cst_17 {dimension_numbers = #tpu.dot_dimension_numbers<[1], [0], [0], [1], [0, 0, 1, 1], [], []>} : vector<16x32xbf16>, vector<32x32xbf16>, vector<16x32xf32> -> vector<16x32xf32>
    %24 = vector.broadcast %18 : vector<1x32xf32> to vector<16x32xf32>
    %25 = arith.addf %23, %24 : vector<16x32xf32>
    %cst_18 = arith.constant 0.353553385 : f32
    %26 = vector.broadcast %cst_18 : f32 to vector<16x32xf32>
    %27 = arith.mulf %25, %26 : vector<16x32xf32>
    %28 = vector.shape_cast %27 : vector<16x32xf32> to vector<2x8x32xf32>
    %29 = arith.truncf %28 : vector<2x8x32xf32> to vector<2x8x32xbf16>
    %30 = arith.truncf %9 : vector<16x32xf32> to vector<16x32xbf16>
    %cst_19 = arith.constant dense<0.000000e+00> : vector<16x32xf32>
    %31 = tpu.matmul %30, %13, %cst_19 {dimension_numbers = #tpu.dot_dimension_numbers<[1], [0], [0], [1], [0, 0, 1, 1], [], []>} : vector<16x32xbf16>, vector<32x32xbf16>, vector<16x32xf32> -> vector<16x32xf32>
    %32 = vector.broadcast %19 : vector<1x32xf32> to vector<16x32xf32>
    %33 = arith.addf %31, %32 : vector<16x32xf32>
    %34 = vector.shape_cast %33 : vector<16x32xf32> to vector<2x8x32xf32>
    %35 = arith.truncf %34 : vector<2x8x32xf32> to vector<2x8x32xbf16>
    %36 = arith.truncf %9 : vector<16x32xf32> to vector<16x32xbf16>
    %cst_20 = arith.constant dense<0.000000e+00> : vector<16x32xf32>
    %37 = tpu.matmul %36, %15, %cst_20 {dimension_numbers = #tpu.dot_dimension_numbers<[1], [0], [0], [1], [0, 0, 1, 1], [], []>} : vector<16x32xbf16>, vector<32x32xbf16>, vector<16x32xf32> -> vector<16x32xf32>
    %38 = vector.broadcast %20 : vector<1x32xf32> to vector<16x32xf32>
    %39 = arith.addf %37, %38 : vector<16x32xf32>
    %40 = vector.shape_cast %39 : vector<16x32xf32> to vector<2x8x32xf32>
    %41 = arith.truncf %40 : vector<2x8x32xf32> to vector<2x8x32xbf16>
    %42 = vector.extract_strided_slice %29 {offsets = [0, 0, 0], sizes = [2, 8, 8], strides = [1, 1, 1]} : vector<2x8x32xbf16> to vector<2x8x8xbf16>
    %43 = vector.extract_strided_slice %35 {offsets = [0, 0, 0], sizes = [2, 8, 8], strides = [1, 1, 1]} : vector<2x8x32xbf16> to vector<2x8x8xbf16>
    %44 = vector.extract_strided_slice %41 {offsets = [0, 0, 0], sizes = [2, 8, 8], strides = [1, 1, 1]} : vector<2x8x32xbf16> to vector<2x8x8xbf16>
    "tpu.trace_start"() <{level = 10 : i32, message = "bqd,bkd->bqk"}> : () -> ()
    %cst_21 = arith.constant dense<0.000000e+00> : vector<2x8x8xf32>
    %45 = tpu.matmul %42, %43, %cst_21 {dimension_numbers = #tpu.dot_dimension_numbers<[2], [2], [1], [1], [0, 0, 0, 1, 1, 1], [0], [0]>} : vector<2x8x8xbf16>, vector<2x8x8xbf16>, vector<2x8x8xf32> -> vector<2x8x8xf32>
    "tpu.trace_stop"() : () -> ()
    %cst_22 = arith.constant dense<0xFF800000> : vector<2x8xf32>
    %46 = vector.multi_reduction <maximumf>, %45, %cst_22 [2] : vector<2x8x8xf32> to vector<2x8xf32>
    %47 = vector.shape_cast %46 : vector<2x8xf32> to vector<2x8x1xf32>
    %48 = vector.broadcast %47 : vector<2x8x1xf32> to vector<2x8x8xf32>
    %49 = arith.subf %45, %48 : vector<2x8x8xf32>
    %50 = math.exp %49 : vector<2x8x8xf32>
    %cst_23 = arith.constant dense<0.000000e+00> : vector<2x8xf32>
    %51 = vector.multi_reduction <add>, %50, %cst_23 [2] : vector<2x8x8xf32> to vector<2x8xf32>
    %52 = vector.shape_cast %51 : vector<2x8xf32> to vector<2x8x1xf32>
    %53 = tpu.reciprocal %52 {approx = true} : vector<2x8x1xf32> -> vector<2x8x1xf32>
    %54 = vector.broadcast %53 : vector<2x8x1xf32> to vector<2x8x8xf32>
    %55 = arith.mulf %50, %54 : vector<2x8x8xf32>
    %56 = arith.truncf %55 : vector<2x8x8xf32> to vector<2x8x8xbf16>
    "tpu.trace_start"() <{level = 10 : i32, message = "bqk,bkd->bqd"}> : () -> ()
    %cst_24 = arith.constant dense<0.000000e+00> : vector<2x8x8xf32>
    %57 = tpu.matmul %56, %44, %cst_24 {dimension_numbers = #tpu.dot_dimension_numbers<[2], [1], [1], [2], [0, 0, 0, 1, 1, 2], [0], [0]>} : vector<2x8x8xbf16>, vector<2x8x8xbf16>, vector<2x8x8xf32> -> vector<2x8x8xf32>
    "tpu.trace_stop"() : () -> ()
    %58 = vector.extract_strided_slice %29 {offsets = [0, 0, 8], sizes = [2, 8, 8], strides = [1, 1, 1]} : vector<2x8x32xbf16> to vector<2x8x8xbf16>
    %59 = vector.extract_strided_slice %35 {offsets = [0, 0, 8], sizes = [2, 8, 8], strides = [1, 1, 1]} : vector<2x8x32xbf16> to vector<2x8x8xbf16>
    %60 = vector.extract_strided_slice %41 {offsets = [0, 0, 8], sizes = [2, 8, 8], strides = [1, 1, 1]} : vector<2x8x32xbf16> to vector<2x8x8xbf16>
    "tpu.trace_start"() <{level = 10 : i32, message = "bqd,bkd->bqk"}> : () -> ()
    %cst_25 = arith.constant dense<0.000000e+00> : vector<2x8x8xf32>
    %61 = tpu.matmul %58, %59, %cst_25 {dimension_numbers = #tpu.dot_dimension_numbers<[2], [2], [1], [1], [0, 0, 0, 1, 1, 1], [0], [0]>} : vector<2x8x8xbf16>, vector<2x8x8xbf16>, vector<2x8x8xf32> -> vector<2x8x8xf32>
    "tpu.trace_stop"() : () -> ()
    %cst_26 = arith.constant dense<0xFF800000> : vector<2x8xf32>
    %62 = vector.multi_reduction <maximumf>, %61, %cst_26 [2] : vector<2x8x8xf32> to vector<2x8xf32>
    %63 = vector.shape_cast %62 : vector<2x8xf32> to vector<2x8x1xf32>
    %64 = vector.broadcast %63 : vector<2x8x1xf32> to vector<2x8x8xf32>
    %65 = arith.subf %61, %64 : vector<2x8x8xf32>
    %66 = math.exp %65 : vector<2x8x8xf32>
    %cst_27 = arith.constant dense<0.000000e+00> : vector<2x8xf32>
    %67 = vector.multi_reduction <add>, %66, %cst_27 [2] : vector<2x8x8xf32> to vector<2x8xf32>
    %68 = vector.shape_cast %67 : vector<2x8xf32> to vector<2x8x1xf32>
    %69 = tpu.reciprocal %68 {approx = true} : vector<2x8x1xf32> -> vector<2x8x1xf32>
    %70 = vector.broadcast %69 : vector<2x8x1xf32> to vector<2x8x8xf32>
    %71 = arith.mulf %66, %70 : vector<2x8x8xf32>
    %72 = arith.truncf %71 : vector<2x8x8xf32> to vector<2x8x8xbf16>
    "tpu.trace_start"() <{level = 10 : i32, message = "bqk,bkd->bqd"}> : () -> ()
    %cst_28 = arith.constant dense<0.000000e+00> : vector<2x8x8xf32>
    %73 = tpu.matmul %72, %60, %cst_28 {dimension_numbers = #tpu.dot_dimension_numbers<[2], [1], [1], [2], [0, 0, 0, 1, 1, 2], [0], [0]>} : vector<2x8x8xbf16>, vector<2x8x8xbf16>, vector<2x8x8xf32> -> vector<2x8x8xf32>
    "tpu.trace_stop"() : () -> ()
    %74 = vector.extract_strided_slice %29 {offsets = [0, 0, 16], sizes = [2, 8, 8], strides = [1, 1, 1]} : vector<2x8x32xbf16> to vector<2x8x8xbf16>
    %75 = vector.extract_strided_slice %35 {offsets = [0, 0, 16], sizes = [2, 8, 8], strides = [1, 1, 1]} : vector<2x8x32xbf16> to vector<2x8x8xbf16>
    %76 = vector.extract_strided_slice %41 {offsets = [0, 0, 16], sizes = [2, 8, 8], strides = [1, 1, 1]} : vector<2x8x32xbf16> to vector<2x8x8xbf16>
    "tpu.trace_start"() <{level = 10 : i32, message = "bqd,bkd->bqk"}> : () -> ()
    %cst_29 = arith.constant dense<0.000000e+00> : vector<2x8x8xf32>
    %77 = tpu.matmul %74, %75, %cst_29 {dimension_numbers = #tpu.dot_dimension_numbers<[2], [2], [1], [1], [0, 0, 0, 1, 1, 1], [0], [0]>} : vector<2x8x8xbf16>, vector<2x8x8xbf16>, vector<2x8x8xf32> -> vector<2x8x8xf32>
    "tpu.trace_stop"() : () -> ()
    %cst_30 = arith.constant dense<0xFF800000> : vector<2x8xf32>
    %78 = vector.multi_reduction <maximumf>, %77, %cst_30 [2] : vector<2x8x8xf32> to vector<2x8xf32>
    %79 = vector.shape_cast %78 : vector<2x8xf32> to vector<2x8x1xf32>
    %80 = vector.broadcast %79 : vector<2x8x1xf32> to vector<2x8x8xf32>
    %81 = arith.subf %77, %80 : vector<2x8x8xf32>
    %82 = math.exp %81 : vector<2x8x8xf32>
    %cst_31 = arith.constant dense<0.000000e+00> : vector<2x8xf32>
    %83 = vector.multi_reduction <add>, %82, %cst_31 [2] : vector<2x8x8xf32> to vector<2x8xf32>
    %84 = vector.shape_cast %83 : vector<2x8xf32> to vector<2x8x1xf32>
    %85 = tpu.reciprocal %84 {approx = true} : vector<2x8x1xf32> -> vector<2x8x1xf32>
    %86 = vector.broadcast %85 : vector<2x8x1xf32> to vector<2x8x8xf32>
    %87 = arith.mulf %82, %86 : vector<2x8x8xf32>
    %88 = arith.truncf %87 : vector<2x8x8xf32> to vector<2x8x8xbf16>
    "tpu.trace_start"() <{level = 10 : i32, message = "bqk,bkd->bqd"}> : () -> ()
    %cst_32 = arith.constant dense<0.000000e+00> : vector<2x8x8xf32>
    %89 = tpu.matmul %88, %76, %cst_32 {dimension_numbers = #tpu.dot_dimension_numbers<[2], [1], [1], [2], [0, 0, 0, 1, 1, 2], [0], [0]>} : vector<2x8x8xbf16>, vector<2x8x8xbf16>, vector<2x8x8xf32> -> vector<2x8x8xf32>
    "tpu.trace_stop"() : () -> ()
    %90 = vector.extract_strided_slice %29 {offsets = [0, 0, 24], sizes = [2, 8, 8], strides = [1, 1, 1]} : vector<2x8x32xbf16> to vector<2x8x8xbf16>
    %91 = vector.extract_strided_slice %35 {offsets = [0, 0, 24], sizes = [2, 8, 8], strides = [1, 1, 1]} : vector<2x8x32xbf16> to vector<2x8x8xbf16>
    %92 = vector.extract_strided_slice %41 {offsets = [0, 0, 24], sizes = [2, 8, 8], strides = [1, 1, 1]} : vector<2x8x32xbf16> to vector<2x8x8xbf16>
    "tpu.trace_start"() <{level = 10 : i32, message = "bqd,bkd->bqk"}> : () -> ()
    %cst_33 = arith.constant dense<0.000000e+00> : vector<2x8x8xf32>
    %93 = tpu.matmul %90, %91, %cst_33 {dimension_numbers = #tpu.dot_dimension_numbers<[2], [2], [1], [1], [0, 0, 0, 1, 1, 1], [0], [0]>} : vector<2x8x8xbf16>, vector<2x8x8xbf16>, vector<2x8x8xf32> -> vector<2x8x8xf32>
    "tpu.trace_stop"() : () -> ()
    %cst_34 = arith.constant dense<0xFF800000> : vector<2x8xf32>
    %94 = vector.multi_reduction <maximumf>, %93, %cst_34 [2] : vector<2x8x8xf32> to vector<2x8xf32>
    %95 = vector.shape_cast %94 : vector<2x8xf32> to vector<2x8x1xf32>
    %96 = vector.broadcast %95 : vector<2x8x1xf32> to vector<2x8x8xf32>
    %97 = arith.subf %93, %96 : vector<2x8x8xf32>
    %98 = math.exp %97 : vector<2x8x8xf32>
    %cst_35 = arith.constant dense<0.000000e+00> : vector<2x8xf32>
    %99 = vector.multi_reduction <add>, %98, %cst_35 [2] : vector<2x8x8xf32> to vector<2x8xf32>
    %100 = vector.shape_cast %99 : vector<2x8xf32> to vector<2x8x1xf32>
    %101 = tpu.reciprocal %100 {approx = true} : vector<2x8x1xf32> -> vector<2x8x1xf32>
    %102 = vector.broadcast %101 : vector<2x8x1xf32> to vector<2x8x8xf32>
    %103 = arith.mulf %98, %102 : vector<2x8x8xf32>
    %104 = arith.truncf %103 : vector<2x8x8xf32> to vector<2x8x8xbf16>
    "tpu.trace_start"() <{level = 10 : i32, message = "bqk,bkd->bqd"}> : () -> ()
    %cst_36 = arith.constant dense<0.000000e+00> : vector<2x8x8xf32>
    %105 = tpu.matmul %104, %92, %cst_36 {dimension_numbers = #tpu.dot_dimension_numbers<[2], [1], [1], [2], [0, 0, 0, 1, 1, 2], [0], [0]>} : vector<2x8x8xbf16>, vector<2x8x8xbf16>, vector<2x8x8xf32> -> vector<2x8x8xf32>
    "tpu.trace_stop"() : () -> ()
    %106 = tpu.concatenate %57, %73, %89, %105 in 2 : vector<2x8x8xf32>, vector<2x8x8xf32>, vector<2x8x8xf32>, vector<2x8x8xf32> -> vector<2x8x32xf32>
    %107 = vector.shape_cast %106 : vector<2x8x32xf32> to vector<16x32xf32>
    %108 = arith.truncf %107 : vector<16x32xf32> to vector<16x32xbf16>
    %cst_37 = arith.constant dense<0.000000e+00> : vector<16x32xf32>
    %109 = tpu.matmul %108, %17, %cst_37 {dimension_numbers = #tpu.dot_dimension_numbers<[1], [0], [0], [1], [0, 0, 1, 1], [], []>} : vector<16x32xbf16>, vector<32x32xbf16>, vector<16x32xf32> -> vector<16x32xf32>
    %110 = vector.broadcast %21 : vector<1x32xf32> to vector<16x32xf32>
    %111 = arith.addf %109, %110 : vector<16x32xf32>
    %112 = arith.addf %9, %111 : vector<16x32xf32>
    %113 = vector.extract_strided_slice %3 {offsets = [0, 0], sizes = [8, 1], strides = [1, 1]} : vector<8x4xf32> to vector<8x1xf32>
    %114 = vector.extract_strided_slice %3 {offsets = [0, 1], sizes = [8, 1], strides = [1, 1]} : vector<8x4xf32> to vector<8x1xf32>
    %115 = vector.shape_cast %112 : vector<16x32xf32> to vector<2x8x32xf32>
    %cst_38 = arith.constant dense<0.000000e+00> : vector<2x8xf32>
    %116 = vector.multi_reduction <add>, %115, %cst_38 [2] : vector<2x8x32xf32> to vector<2x8xf32>
    %117 = vector.shape_cast %116 : vector<2x8xf32> to vector<2x8x1xf32>
    %cst_39 = arith.constant dense<0.000000e+00> : vector<8x1xf32>
    %118 = vector.multi_reduction <add>, %117, %cst_39 [0] : vector<2x8x1xf32> to vector<8x1xf32>
    %119 = vector.shape_cast %118 : vector<8x1xf32> to vector<1x8x1xf32>
    %cst_40 = arith.constant 6.400000e+01 : f32
    %120 = vector.broadcast %cst_40 : f32 to vector<1x8x1xf32>
    %121 = arith.divf %119, %120 : vector<1x8x1xf32>
    %122 = vector.broadcast %121 : vector<1x8x1xf32> to vector<2x8x32xf32>
    %123 = arith.subf %115, %122 : vector<2x8x32xf32>
    %124 = arith.mulf %123, %123 : vector<2x8x32xf32>
    %cst_41 = arith.constant dense<0.000000e+00> : vector<2x8xf32>
    %125 = vector.multi_reduction <add>, %124, %cst_41 [2] : vector<2x8x32xf32> to vector<2x8xf32>
    %126 = vector.shape_cast %125 : vector<2x8xf32> to vector<2x8x1xf32>
    %cst_42 = arith.constant dense<0.000000e+00> : vector<8x1xf32>
    %127 = vector.multi_reduction <add>, %126, %cst_42 [0] : vector<2x8x1xf32> to vector<8x1xf32>
    %128 = vector.shape_cast %127 : vector<8x1xf32> to vector<1x8x1xf32>
    %cst_43 = arith.constant 6.400000e+01 : f32
    %129 = vector.broadcast %cst_43 : f32 to vector<1x8x1xf32>
    %130 = arith.divf %128, %129 : vector<1x8x1xf32>
    %cst_44 = arith.constant 9.99999974E-6 : f32
    %131 = vector.broadcast %cst_44 : f32 to vector<1x8x1xf32>
    %132 = arith.addf %130, %131 : vector<1x8x1xf32>
    %133 = math.rsqrt %132 : vector<1x8x1xf32>
    %134 = vector.broadcast %133 : vector<1x8x1xf32> to vector<2x8x32xf32>
    %135 = arith.mulf %123, %134 : vector<2x8x32xf32>
    %136 = vector.shape_cast %113 : vector<8x1xf32> to vector<1x8x1xf32>
    %137 = vector.broadcast %136 : vector<1x8x1xf32> to vector<2x8x32xf32>
    %138 = arith.mulf %135, %137 : vector<2x8x32xf32>
    %139 = vector.shape_cast %114 : vector<8x1xf32> to vector<1x8x1xf32>
    %140 = vector.broadcast %139 : vector<1x8x1xf32> to vector<2x8x32xf32>
    %141 = arith.addf %138, %140 : vector<2x8x32xf32>
    %142 = vector.shape_cast %141 : vector<2x8x32xf32> to vector<16x32xf32>
    %c4 = arith.constant 4 : index
    %c0_45 = arith.constant 0 : index
    %c0_46 = arith.constant 0 : index
    %143 = vector.load %arg2[%c4, %c0_45, %c0_46] : memref<11x32x32xbf16, #tpu.memory_space<vmem>>, vector<1x32x32xbf16>
    %144 = vector.shape_cast %143 : vector<1x32x32xbf16> to vector<32x32xbf16>
    %145 = vector.extract_strided_slice %2 {offsets = [5, 0], sizes = [1, 32], strides = [1, 1]} : vector<12x32xf32> to vector<1x32xf32>
    %146 = arith.truncf %142 : vector<16x32xf32> to vector<16x32xbf16>
    %cst_47 = arith.constant dense<0.000000e+00> : vector<16x32xf32>
    %147 = tpu.matmul %146, %144, %cst_47 {dimension_numbers = #tpu.dot_dimension_numbers<[1], [0], [0], [1], [0, 0, 1, 1], [], []>} : vector<16x32xbf16>, vector<32x32xbf16>, vector<16x32xf32> -> vector<16x32xf32>
    %148 = vector.broadcast %145 : vector<1x32xf32> to vector<16x32xf32>
    %149 = arith.addf %147, %148 : vector<16x32xf32>
    %cst_48 = arith.constant 0.000000e+00 : f32
    %150 = vector.broadcast %cst_48 : f32 to vector<16x32xf32>
    %151 = arith.maximumf %149, %150 : vector<16x32xf32>
    %c5 = arith.constant 5 : index
    %c0_49 = arith.constant 0 : index
    %c0_50 = arith.constant 0 : index
    %152 = vector.load %arg2[%c5, %c0_49, %c0_50] : memref<11x32x32xbf16, #tpu.memory_space<vmem>>, vector<1x32x32xbf16>
    %153 = vector.shape_cast %152 : vector<1x32x32xbf16> to vector<32x32xbf16>
    %154 = vector.extract_strided_slice %2 {offsets = [6, 0], sizes = [1, 32], strides = [1, 1]} : vector<12x32xf32> to vector<1x32xf32>
    %155 = arith.truncf %151 : vector<16x32xf32> to vector<16x32xbf16>
    %cst_51 = arith.constant dense<0.000000e+00> : vector<16x32xf32>
    %156 = tpu.matmul %155, %153, %cst_51 {dimension_numbers = #tpu.dot_dimension_numbers<[1], [0], [0], [1], [0, 0, 1, 1], [], []>} : vector<16x32xbf16>, vector<32x32xbf16>, vector<16x32xf32> -> vector<16x32xf32>
    %157 = vector.broadcast %154 : vector<1x32xf32> to vector<16x32xf32>
    %158 = arith.addf %156, %157 : vector<16x32xf32>
    %159 = arith.addf %142, %158 : vector<16x32xf32>
    %160 = vector.extract_strided_slice %3 {offsets = [0, 2], sizes = [8, 1], strides = [1, 1]} : vector<8x4xf32> to vector<8x1xf32>
    %161 = vector.extract_strided_slice %3 {offsets = [0, 3], sizes = [8, 1], strides = [1, 1]} : vector<8x4xf32> to vector<8x1xf32>
    %162 = vector.shape_cast %159 : vector<16x32xf32> to vector<2x8x32xf32>
    %cst_52 = arith.constant dense<0.000000e+00> : vector<2x8xf32>
    %163 = vector.multi_reduction <add>, %162, %cst_52 [2] : vector<2x8x32xf32> to vector<2x8xf32>
    %164 = vector.shape_cast %163 : vector<2x8xf32> to vector<2x8x1xf32>
    %cst_53 = arith.constant dense<0.000000e+00> : vector<8x1xf32>
    %165 = vector.multi_reduction <add>, %164, %cst_53 [0] : vector<2x8x1xf32> to vector<8x1xf32>
    %166 = vector.shape_cast %165 : vector<8x1xf32> to vector<1x8x1xf32>
    %cst_54 = arith.constant 6.400000e+01 : f32
    %167 = vector.broadcast %cst_54 : f32 to vector<1x8x1xf32>
    %168 = arith.divf %166, %167 : vector<1x8x1xf32>
    %169 = vector.broadcast %168 : vector<1x8x1xf32> to vector<2x8x32xf32>
    %170 = arith.subf %162, %169 : vector<2x8x32xf32>
    %171 = arith.mulf %170, %170 : vector<2x8x32xf32>
    %cst_55 = arith.constant dense<0.000000e+00> : vector<2x8xf32>
    %172 = vector.multi_reduction <add>, %171, %cst_55 [2] : vector<2x8x32xf32> to vector<2x8xf32>
    %173 = vector.shape_cast %172 : vector<2x8xf32> to vector<2x8x1xf32>
    %cst_56 = arith.constant dense<0.000000e+00> : vector<8x1xf32>
    %174 = vector.multi_reduction <add>, %173, %cst_56 [0] : vector<2x8x1xf32> to vector<8x1xf32>
    %175 = vector.shape_cast %174 : vector<8x1xf32> to vector<1x8x1xf32>
    %cst_57 = arith.constant 6.400000e+01 : f32
    %176 = vector.broadcast %cst_57 : f32 to vector<1x8x1xf32>
    %177 = arith.divf %175, %176 : vector<1x8x1xf32>
    %cst_58 = arith.constant 9.99999974E-6 : f32
    %178 = vector.broadcast %cst_58 : f32 to vector<1x8x1xf32>
    %179 = arith.addf %177, %178 : vector<1x8x1xf32>
    %180 = math.rsqrt %179 : vector<1x8x1xf32>
    %181 = vector.broadcast %180 : vector<1x8x1xf32> to vector<2x8x32xf32>
    %182 = arith.mulf %170, %181 : vector<2x8x32xf32>
    %183 = vector.shape_cast %160 : vector<8x1xf32> to vector<1x8x1xf32>
    %184 = vector.broadcast %183 : vector<1x8x1xf32> to vector<2x8x32xf32>
    %185 = arith.mulf %182, %184 : vector<2x8x32xf32>
    %186 = vector.shape_cast %161 : vector<8x1xf32> to vector<1x8x1xf32>
    %187 = vector.broadcast %186 : vector<1x8x1xf32> to vector<2x8x32xf32>
    %188 = arith.addf %185, %187 : vector<2x8x32xf32>
    %189 = vector.shape_cast %188 : vector<2x8x32xf32> to vector<16x32xf32>
    %c6 = arith.constant 6 : index
    %c0_59 = arith.constant 0 : index
    %c0_60 = arith.constant 0 : index
    %190 = vector.load %arg2[%c6, %c0_59, %c0_60] : memref<11x32x32xbf16, #tpu.memory_space<vmem>>, vector<1x32x32xbf16>
    %191 = vector.shape_cast %190 : vector<1x32x32xbf16> to vector<32x32xbf16>
    %c7 = arith.constant 7 : index
    %c0_61 = arith.constant 0 : index
    %c0_62 = arith.constant 0 : index
    %192 = vector.load %arg2[%c7, %c0_61, %c0_62] : memref<11x32x32xbf16, #tpu.memory_space<vmem>>, vector<1x32x32xbf16>
    %193 = vector.shape_cast %192 : vector<1x32x32xbf16> to vector<32x32xbf16>
    %c8 = arith.constant 8 : index
    %c0_63 = arith.constant 0 : index
    %c0_64 = arith.constant 0 : index
    %194 = vector.load %arg2[%c8, %c0_63, %c0_64] : memref<11x32x32xbf16, #tpu.memory_space<vmem>>, vector<1x32x32xbf16>
    %195 = vector.shape_cast %194 : vector<1x32x32xbf16> to vector<32x32xbf16>
    %c9 = arith.constant 9 : index
    %c0_65 = arith.constant 0 : index
    %c0_66 = arith.constant 0 : index
    %196 = vector.load %arg2[%c9, %c0_65, %c0_66] : memref<11x32x32xbf16, #tpu.memory_space<vmem>>, vector<1x32x32xbf16>
    %197 = vector.shape_cast %196 : vector<1x32x32xbf16> to vector<32x32xbf16>
    %198 = vector.extract_strided_slice %2 {offsets = [7, 0], sizes = [1, 32], strides = [1, 1]} : vector<12x32xf32> to vector<1x32xf32>
    %199 = vector.extract_strided_slice %2 {offsets = [8, 0], sizes = [1, 32], strides = [1, 1]} : vector<12x32xf32> to vector<1x32xf32>
    %200 = vector.extract_strided_slice %2 {offsets = [9, 0], sizes = [1, 32], strides = [1, 1]} : vector<12x32xf32> to vector<1x32xf32>
    %201 = vector.extract_strided_slice %2 {offsets = [10, 0], sizes = [1, 32], strides = [1, 1]} : vector<12x32xf32> to vector<1x32xf32>
    %202 = arith.truncf %189 : vector<16x32xf32> to vector<16x32xbf16>
    %cst_67 = arith.constant dense<0.000000e+00> : vector<16x32xf32>
    %203 = tpu.matmul %202, %191, %cst_67 {dimension_numbers = #tpu.dot_dimension_numbers<[1], [0], [0], [1], [0, 0, 1, 1], [], []>} : vector<16x32xbf16>, vector<32x32xbf16>, vector<16x32xf32> -> vector<16x32xf32>
    %204 = vector.broadcast %198 : vector<1x32xf32> to vector<16x32xf32>
    %205 = arith.addf %203, %204 : vector<16x32xf32>
    %cst_68 = arith.constant 0.353553385 : f32
    %206 = vector.broadcast %cst_68 : f32 to vector<16x32xf32>
    %207 = arith.mulf %205, %206 : vector<16x32xf32>
    %208 = vector.shape_cast %207 : vector<16x32xf32> to vector<2x8x32xf32>
    %209 = arith.truncf %208 : vector<2x8x32xf32> to vector<2x8x32xbf16>
    %210 = arith.truncf %189 : vector<16x32xf32> to vector<16x32xbf16>
    %cst_69 = arith.constant dense<0.000000e+00> : vector<16x32xf32>
    %211 = tpu.matmul %210, %193, %cst_69 {dimension_numbers = #tpu.dot_dimension_numbers<[1], [0], [0], [1], [0, 0, 1, 1], [], []>} : vector<16x32xbf16>, vector<32x32xbf16>, vector<16x32xf32> -> vector<16x32xf32>
    %212 = vector.broadcast %199 : vector<1x32xf32> to vector<16x32xf32>
    %213 = arith.addf %211, %212 : vector<16x32xf32>
    %214 = vector.shape_cast %213 : vector<16x32xf32> to vector<2x8x32xf32>
    %215 = arith.truncf %214 : vector<2x8x32xf32> to vector<2x8x32xbf16>
    %216 = arith.truncf %189 : vector<16x32xf32> to vector<16x32xbf16>
    %cst_70 = arith.constant dense<0.000000e+00> : vector<16x32xf32>
    %217 = tpu.matmul %216, %195, %cst_70 {dimension_numbers = #tpu.dot_dimension_numbers<[1], [0], [0], [1], [0, 0, 1, 1], [], []>} : vector<16x32xbf16>, vector<32x32xbf16>, vector<16x32xf32> -> vector<16x32xf32>
    %218 = vector.broadcast %200 : vector<1x32xf32> to vector<16x32xf32>
    %219 = arith.addf %217, %218 : vector<16x32xf32>
    %220 = vector.shape_cast %219 : vector<16x32xf32> to vector<2x8x32xf32>
    %221 = arith.truncf %220 : vector<2x8x32xf32> to vector<2x8x32xbf16>
    %222 = vector.extract_strided_slice %209 {offsets = [0, 0, 0], sizes = [2, 8, 8], strides = [1, 1, 1]} : vector<2x8x32xbf16> to vector<2x8x8xbf16>
    %223 = vector.extract_strided_slice %215 {offsets = [0, 0, 0], sizes = [2, 8, 8], strides = [1, 1, 1]} : vector<2x8x32xbf16> to vector<2x8x8xbf16>
    %224 = vector.extract_strided_slice %221 {offsets = [0, 0, 0], sizes = [2, 8, 8], strides = [1, 1, 1]} : vector<2x8x32xbf16> to vector<2x8x8xbf16>
    "tpu.trace_start"() <{level = 10 : i32, message = "bqd,bkd->bqk"}> : () -> ()
    %cst_71 = arith.constant dense<0.000000e+00> : vector<2x8x8xf32>
    %225 = tpu.matmul %222, %223, %cst_71 {dimension_numbers = #tpu.dot_dimension_numbers<[2], [2], [1], [1], [0, 0, 0, 1, 1, 1], [0], [0]>} : vector<2x8x8xbf16>, vector<2x8x8xbf16>, vector<2x8x8xf32> -> vector<2x8x8xf32>
    "tpu.trace_stop"() : () -> ()
    %cst_72 = arith.constant dense<0xFF800000> : vector<2x8xf32>
    %226 = vector.multi_reduction <maximumf>, %225, %cst_72 [2] : vector<2x8x8xf32> to vector<2x8xf32>
    %227 = vector.shape_cast %226 : vector<2x8xf32> to vector<2x8x1xf32>
    %228 = vector.broadcast %227 : vector<2x8x1xf32> to vector<2x8x8xf32>
    %229 = arith.subf %225, %228 : vector<2x8x8xf32>
    %230 = math.exp %229 : vector<2x8x8xf32>
    %cst_73 = arith.constant dense<0.000000e+00> : vector<2x8xf32>
    %231 = vector.multi_reduction <add>, %230, %cst_73 [2] : vector<2x8x8xf32> to vector<2x8xf32>
    %232 = vector.shape_cast %231 : vector<2x8xf32> to vector<2x8x1xf32>
    %233 = tpu.reciprocal %232 {approx = true} : vector<2x8x1xf32> -> vector<2x8x1xf32>
    %234 = vector.broadcast %233 : vector<2x8x1xf32> to vector<2x8x8xf32>
    %235 = arith.mulf %230, %234 : vector<2x8x8xf32>
    %236 = arith.truncf %235 : vector<2x8x8xf32> to vector<2x8x8xbf16>
    "tpu.trace_start"() <{level = 10 : i32, message = "bqk,bkd->bqd"}> : () -> ()
    %cst_74 = arith.constant dense<0.000000e+00> : vector<2x8x8xf32>
    %237 = tpu.matmul %236, %224, %cst_74 {dimension_numbers = #tpu.dot_dimension_numbers<[2], [1], [1], [2], [0, 0, 0, 1, 1, 2], [0], [0]>} : vector<2x8x8xbf16>, vector<2x8x8xbf16>, vector<2x8x8xf32> -> vector<2x8x8xf32>
    "tpu.trace_stop"() : () -> ()
    %238 = vector.extract_strided_slice %209 {offsets = [0, 0, 8], sizes = [2, 8, 8], strides = [1, 1, 1]} : vector<2x8x32xbf16> to vector<2x8x8xbf16>
    %239 = vector.extract_strided_slice %215 {offsets = [0, 0, 8], sizes = [2, 8, 8], strides = [1, 1, 1]} : vector<2x8x32xbf16> to vector<2x8x8xbf16>
    %240 = vector.extract_strided_slice %221 {offsets = [0, 0, 8], sizes = [2, 8, 8], strides = [1, 1, 1]} : vector<2x8x32xbf16> to vector<2x8x8xbf16>
    "tpu.trace_start"() <{level = 10 : i32, message = "bqd,bkd->bqk"}> : () -> ()
    %cst_75 = arith.constant dense<0.000000e+00> : vector<2x8x8xf32>
    %241 = tpu.matmul %238, %239, %cst_75 {dimension_numbers = #tpu.dot_dimension_numbers<[2], [2], [1], [1], [0, 0, 0, 1, 1, 1], [0], [0]>} : vector<2x8x8xbf16>, vector<2x8x8xbf16>, vector<2x8x8xf32> -> vector<2x8x8xf32>
    "tpu.trace_stop"() : () -> ()
    %cst_76 = arith.constant dense<0xFF800000> : vector<2x8xf32>
    %242 = vector.multi_reduction <maximumf>, %241, %cst_76 [2] : vector<2x8x8xf32> to vector<2x8xf32>
    %243 = vector.shape_cast %242 : vector<2x8xf32> to vector<2x8x1xf32>
    %244 = vector.broadcast %243 : vector<2x8x1xf32> to vector<2x8x8xf32>
    %245 = arith.subf %241, %244 : vector<2x8x8xf32>
    %246 = math.exp %245 : vector<2x8x8xf32>
    %cst_77 = arith.constant dense<0.000000e+00> : vector<2x8xf32>
    %247 = vector.multi_reduction <add>, %246, %cst_77 [2] : vector<2x8x8xf32> to vector<2x8xf32>
    %248 = vector.shape_cast %247 : vector<2x8xf32> to vector<2x8x1xf32>
    %249 = tpu.reciprocal %248 {approx = true} : vector<2x8x1xf32> -> vector<2x8x1xf32>
    %250 = vector.broadcast %249 : vector<2x8x1xf32> to vector<2x8x8xf32>
    %251 = arith.mulf %246, %250 : vector<2x8x8xf32>
    %252 = arith.truncf %251 : vector<2x8x8xf32> to vector<2x8x8xbf16>
    "tpu.trace_start"() <{level = 10 : i32, message = "bqk,bkd->bqd"}> : () -> ()
    %cst_78 = arith.constant dense<0.000000e+00> : vector<2x8x8xf32>
    %253 = tpu.matmul %252, %240, %cst_78 {dimension_numbers = #tpu.dot_dimension_numbers<[2], [1], [1], [2], [0, 0, 0, 1, 1, 2], [0], [0]>} : vector<2x8x8xbf16>, vector<2x8x8xbf16>, vector<2x8x8xf32> -> vector<2x8x8xf32>
    "tpu.trace_stop"() : () -> ()
    %254 = vector.extract_strided_slice %209 {offsets = [0, 0, 16], sizes = [2, 8, 8], strides = [1, 1, 1]} : vector<2x8x32xbf16> to vector<2x8x8xbf16>
    %255 = vector.extract_strided_slice %215 {offsets = [0, 0, 16], sizes = [2, 8, 8], strides = [1, 1, 1]} : vector<2x8x32xbf16> to vector<2x8x8xbf16>
    %256 = vector.extract_strided_slice %221 {offsets = [0, 0, 16], sizes = [2, 8, 8], strides = [1, 1, 1]} : vector<2x8x32xbf16> to vector<2x8x8xbf16>
    "tpu.trace_start"() <{level = 10 : i32, message = "bqd,bkd->bqk"}> : () -> ()
    %cst_79 = arith.constant dense<0.000000e+00> : vector<2x8x8xf32>
    %257 = tpu.matmul %254, %255, %cst_79 {dimension_numbers = #tpu.dot_dimension_numbers<[2], [2], [1], [1], [0, 0, 0, 1, 1, 1], [0], [0]>} : vector<2x8x8xbf16>, vector<2x8x8xbf16>, vector<2x8x8xf32> -> vector<2x8x8xf32>
    "tpu.trace_stop"() : () -> ()
    %cst_80 = arith.constant dense<0xFF800000> : vector<2x8xf32>
    %258 = vector.multi_reduction <maximumf>, %257, %cst_80 [2] : vector<2x8x8xf32> to vector<2x8xf32>
    %259 = vector.shape_cast %258 : vector<2x8xf32> to vector<2x8x1xf32>
    %260 = vector.broadcast %259 : vector<2x8x1xf32> to vector<2x8x8xf32>
    %261 = arith.subf %257, %260 : vector<2x8x8xf32>
    %262 = math.exp %261 : vector<2x8x8xf32>
    %cst_81 = arith.constant dense<0.000000e+00> : vector<2x8xf32>
    %263 = vector.multi_reduction <add>, %262, %cst_81 [2] : vector<2x8x8xf32> to vector<2x8xf32>
    %264 = vector.shape_cast %263 : vector<2x8xf32> to vector<2x8x1xf32>
    %265 = tpu.reciprocal %264 {approx = true} : vector<2x8x1xf32> -> vector<2x8x1xf32>
    %266 = vector.broadcast %265 : vector<2x8x1xf32> to vector<2x8x8xf32>
    %267 = arith.mulf %262, %266 : vector<2x8x8xf32>
    %268 = arith.truncf %267 : vector<2x8x8xf32> to vector<2x8x8xbf16>
    "tpu.trace_start"() <{level = 10 : i32, message = "bqk,bkd->bqd"}> : () -> ()
    %cst_82 = arith.constant dense<0.000000e+00> : vector<2x8x8xf32>
    %269 = tpu.matmul %268, %256, %cst_82 {dimension_numbers = #tpu.dot_dimension_numbers<[2], [1], [1], [2], [0, 0, 0, 1, 1, 2], [0], [0]>} : vector<2x8x8xbf16>, vector<2x8x8xbf16>, vector<2x8x8xf32> -> vector<2x8x8xf32>
    "tpu.trace_stop"() : () -> ()
    %270 = vector.extract_strided_slice %209 {offsets = [0, 0, 24], sizes = [2, 8, 8], strides = [1, 1, 1]} : vector<2x8x32xbf16> to vector<2x8x8xbf16>
    %271 = vector.extract_strided_slice %215 {offsets = [0, 0, 24], sizes = [2, 8, 8], strides = [1, 1, 1]} : vector<2x8x32xbf16> to vector<2x8x8xbf16>
    %272 = vector.extract_strided_slice %221 {offsets = [0, 0, 24], sizes = [2, 8, 8], strides = [1, 1, 1]} : vector<2x8x32xbf16> to vector<2x8x8xbf16>
    "tpu.trace_start"() <{level = 10 : i32, message = "bqd,bkd->bqk"}> : () -> ()
    %cst_83 = arith.constant dense<0.000000e+00> : vector<2x8x8xf32>
    %273 = tpu.matmul %270, %271, %cst_83 {dimension_numbers = #tpu.dot_dimension_numbers<[2], [2], [1], [1], [0, 0, 0, 1, 1, 1], [0], [0]>} : vector<2x8x8xbf16>, vector<2x8x8xbf16>, vector<2x8x8xf32> -> vector<2x8x8xf32>
    "tpu.trace_stop"() : () -> ()
    %cst_84 = arith.constant dense<0xFF800000> : vector<2x8xf32>
    %274 = vector.multi_reduction <maximumf>, %273, %cst_84 [2] : vector<2x8x8xf32> to vector<2x8xf32>
    %275 = vector.shape_cast %274 : vector<2x8xf32> to vector<2x8x1xf32>
    %276 = vector.broadcast %275 : vector<2x8x1xf32> to vector<2x8x8xf32>
    %277 = arith.subf %273, %276 : vector<2x8x8xf32>
    %278 = math.exp %277 : vector<2x8x8xf32>
    %cst_85 = arith.constant dense<0.000000e+00> : vector<2x8xf32>
    %279 = vector.multi_reduction <add>, %278, %cst_85 [2] : vector<2x8x8xf32> to vector<2x8xf32>
    %280 = vector.shape_cast %279 : vector<2x8xf32> to vector<2x8x1xf32>
    %281 = tpu.reciprocal %280 {approx = true} : vector<2x8x1xf32> -> vector<2x8x1xf32>
    %282 = vector.broadcast %281 : vector<2x8x1xf32> to vector<2x8x8xf32>
    %283 = arith.mulf %278, %282 : vector<2x8x8xf32>
    %284 = arith.truncf %283 : vector<2x8x8xf32> to vector<2x8x8xbf16>
    "tpu.trace_start"() <{level = 10 : i32, message = "bqk,bkd->bqd"}> : () -> ()
    %cst_86 = arith.constant dense<0.000000e+00> : vector<2x8x8xf32>
    %285 = tpu.matmul %284, %272, %cst_86 {dimension_numbers = #tpu.dot_dimension_numbers<[2], [1], [1], [2], [0, 0, 0, 1, 1, 2], [0], [0]>} : vector<2x8x8xbf16>, vector<2x8x8xbf16>, vector<2x8x8xf32> -> vector<2x8x8xf32>
    "tpu.trace_stop"() : () -> ()
    %286 = tpu.concatenate %237, %253, %269, %285 in 2 : vector<2x8x8xf32>, vector<2x8x8xf32>, vector<2x8x8xf32>, vector<2x8x8xf32> -> vector<2x8x32xf32>
    %287 = vector.shape_cast %286 : vector<2x8x32xf32> to vector<16x32xf32>
    %288 = arith.truncf %287 : vector<16x32xf32> to vector<16x32xbf16>
    %cst_87 = arith.constant dense<0.000000e+00> : vector<16x32xf32>
    %289 = tpu.matmul %288, %197, %cst_87 {dimension_numbers = #tpu.dot_dimension_numbers<[1], [0], [0], [1], [0, 0, 1, 1], [], []>} : vector<16x32xbf16>, vector<32x32xbf16>, vector<16x32xf32> -> vector<16x32xf32>
    %290 = vector.broadcast %201 : vector<1x32xf32> to vector<16x32xf32>
    %291 = arith.addf %289, %290 : vector<16x32xf32>
    %c10 = arith.constant 10 : index
    %c0_88 = arith.constant 0 : index
    %c0_89 = arith.constant 0 : index
    %292 = vector.load %arg2[%c10, %c0_88, %c0_89] : memref<11x32x32xbf16, #tpu.memory_space<vmem>>, vector<1x32x32xbf16>
    %293 = vector.shape_cast %292 : vector<1x32x32xbf16> to vector<32x32xbf16>
    %294 = vector.extract_strided_slice %2 {offsets = [11, 0], sizes = [1, 32], strides = [1, 1]} : vector<12x32xf32> to vector<1x32xf32>
    %295 = arith.truncf %291 : vector<16x32xf32> to vector<16x32xbf16>
    %cst_90 = arith.constant dense<0.000000e+00> : vector<16x32xf32>
    %296 = tpu.matmul %295, %293, %cst_90 {dimension_numbers = #tpu.dot_dimension_numbers<[1], [0], [0], [1], [0, 0, 1, 1], [], []>} : vector<16x32xbf16>, vector<32x32xbf16>, vector<16x32xf32> -> vector<16x32xf32>
    %297 = vector.broadcast %294 : vector<1x32xf32> to vector<16x32xf32>
    %298 = arith.addf %296, %297 : vector<16x32xf32>
    %cst_91 = arith.constant 0.000000e+00 : f32
    %299 = vector.broadcast %cst_91 : f32 to vector<16x32xf32>
    %300 = arith.maximumf %298, %299 : vector<16x32xf32>
    %c0_92 = arith.constant 0 : index
    %c0_93 = arith.constant 0 : index
    %301 = vector.load %arg3[%c0_92, %c0_93] : memref<32x128xbf16, #tpu.memory_space<vmem>>, vector<32x128xbf16>
    %c0_94 = arith.constant 0 : index
    %c0_95 = arith.constant 0 : index
    %302 = vector.load %arg5[%c0_94, %c0_95] : memref<1x128xf32, #tpu.memory_space<vmem>>, vector<1x128xf32>
    %303 = arith.truncf %300 : vector<16x32xf32> to vector<16x32xbf16>
    %cst_96 = arith.constant dense<0.000000e+00> : vector<16x128xf32>
    %304 = tpu.matmul %303, %301, %cst_96 {dimension_numbers = #tpu.dot_dimension_numbers<[1], [0], [0], [1], [0, 0, 1, 1], [], []>} : vector<16x32xbf16>, vector<32x128xbf16>, vector<16x128xf32> -> vector<16x128xf32>
    %305 = vector.broadcast %302 : vector<1x128xf32> to vector<16x128xf32>
    %306 = arith.addf %304, %305 : vector<16x128xf32>
    %c0_97 = arith.constant 0 : index
    %c0_98 = arith.constant 0 : index
    %307 = vector.load %arg7[%c0_97, %c0_98] : memref<16x128xf32, #tpu.memory_space<vmem>>, vector<16x128xf32>
    tpu.vector_store %arg7[%c0_97, %c0_98], %306 {strides = array<i32>} : memref<16x128xf32, #tpu.memory_space<vmem>>, vector<16x128xf32>,
    return
  }
}

</mosaic_0001>

<bundles_post_ra>
// kernel: tpu_custom_call.1
= control target key start
LH: loop header
LB: loop body
LE: loop exit
PB: predicated region body
PF: predicated region fallthrough
CT: control target
= control target key end

     0   :  { %12 = vsyncpa [#allocation3], 0  ;;  %s4155_s0 = inlined_call_operand.hbm [shape: f32[2,8,16], index: 0, kind: input, shape index: {}]   ;;  %s4156_s1 = inlined_call_operand.hbm [shape: bf16[16,32], index: 1, kind: input, shape index: {}]   ;;  %s4157_s2 = inlined_call_operand.hbm [shape: bf16[11,32,32], index: 2, kind: input, shape index: {}]   ;;  %s4158_s3 = inlined_call_operand.vmem [shape: bf16[32,128], index: 3, kind: input, shape index: {}]   ;;  %s4159_s4 = inlined_call_operand.hbm [shape: f32[12,32], index: 4, kind: input, shape index: {}]   ;;  %s4160_s5 = inlined_call_operand.vmem [shape: f32[1,128], index: 5, kind: input, shape index: {}]   ;;  %s4161_s6 = inlined_call_operand.vmem [shape: f32[8,4], index: 6, kind: input, shape index: {}]   ;;  %s4162_s7 = inlined_call_operand.hbm [shape: f32[16,128], index: 7, kind: output, shape index: {}]  }
   0x1   :  { %13 = vsyncpa [#allocation6], 0 }
   0x2   :  { %14 = vsyncpa [#allocation9], 0 }
   0x3   :  { %15 = vsyncpa [#allocation4], 0  ;;  %s3578_s24 = smov [#allocation5]  }
   0x4   :  { %s33_s25 = sshll.u32 %s3578_s24, 4  ;;  %s34_s25 = int_to_ptr.vmem [resolvable:$true] %s33_s25 }
   0x5   :  { %s3478_s26 = scalar_lea.vmem %s34_s25, 128  ;;  %p3483_p1 = scmp.lt.s32.totalorder %s34_s25, %s34_s25 }
   0x6   :  { %p3479_p0 = scmp.ne.s32.totalorder %s34_s25, %s3478_s26  ;;  %p3484_p2 = scmp.lt.s32.totalorder %s3478_s26, %s3478_s26 }
   0x8   :  { %p3485_p3 = por %p3484_p2, %p3483_p1 }
   0xa   :  { %p3486_p4 = pnand %p3485_p3, %p3479_p0 }
   0xc   :  { %3489 = shalt.err (!%p3486_p4)
}
   0xd   :  { %s3579_s27 = smov 64   ;;  %s3580_s28 = smov 4  }
   0xe   :  { %39 = dma.hbm_to_vmem [thread:$0]  %s4156_s1, 128, %s34_s25, [#allocation6], %s3579_s27, %s3579_s27, %s3580_s28  }
   0xf   :  { %s3581_s8 = smov [#allocation2]  }
  0x10   :  { %s21_s9 = sshll.u32 %s3581_s8, 4  ;;  %s22_s9 = int_to_ptr.vmem [resolvable:$true] %s21_s9 }
  0x11   :  { %s3498_s10 = scalar_lea.vmem %s22_s9, 256  ;;  %p3503_p6 = scmp.lt.s32.totalorder %s22_s9, %s22_s9 }
  0x12   :  { %p3499_p5 = scmp.ne.s32.totalorder %s22_s9, %s3498_s10  ;;  %p3504_p7 = scmp.lt.s32.totalorder %s3498_s10, %s3498_s10 }
  0x14   :  { %p3505_p8 = por %p3504_p7, %p3503_p6 }
  0x16   :  { %p3506_p9 = pnand %p3505_p8, %p3499_p5 }
  0x18   :  { %3509 = shalt.err (!%p3506_p9)
}
  0x19   :  { %s3582_s11 = smov 128   ;;  %s3583_s12 = smov 8  }
  0x1a   :  { %27 = dma.hbm_to_vmem [thread:$0]  %s4155_s0, 256, %s22_s9, [#allocation3], %s3582_s11, %s3582_s11, %s3583_s12  }
  0x1b   :  { %s3584_s1 = smov [#allocation7]   ;;  %s3585_s16 = smov [#allocation8]  }
  0x1c   :  { %s45_s15 = sshll.u32 %s3584_s1, 4  ;;  %s59_s17 = sshll.u32 %s3585_s16, 4  ;;  %s46_s15 = int_to_ptr.vmem [resolvable:$true] %s45_s15  ;;  %s60_s17 = int_to_ptr.vmem [resolvable:$true] %s59_s17 }
  0x1d   :  { %s3518_s18 = scalar_lea.vmem %s46_s15, 2816  ;;  %p3523_p11 = scmp.lt.s32.totalorder %s46_s15, %s46_s15 }
  0x1e   :  { %p3519_p10 = scmp.ne.s32.totalorder %s46_s15, %s3518_s18  ;;  %p3524_p12 = scmp.lt.s32.totalorder %s3518_s18, %s3518_s18 }
  0x20   :  { %p3525_p13 = por %p3524_p12, %p3523_p11 }
  0x22   :  { %p3526_p0 = pnand %p3525_p13, %p3519_p10 }
  0x24   :  { %3529 = shalt.err (!%p3526_p0)
}
  0x25   :  { %51 = dma.hbm_to_vmem [thread:$0]  %s4157_s2, 2816, %s46_s15, [#allocation6], %s3579_s27, %s3579_s27, %s3580_s28  }
  0x26   :  { %s3538_s0 = scalar_lea.vmem %s60_s17, 256  ;;  %p3543_p2 = scmp.lt.s32.totalorder %s60_s17, %s60_s17 }
  0x27   :  { %p3539_p1 = scmp.ne.s32.totalorder %s60_s17, %s3538_s0  ;;  %p3544_p3 = scmp.lt.s32.totalorder %s3538_s0, %s3538_s0 }
  0x29   :  { %p3545_p4 = por %p3544_p3, %p3543_p2 }
  0x2b   :  { %p3546_p5 = pnand %p3545_p4, %p3539_p1 }
  0x2d   :  { %3549 = shalt.err (!%p3546_p5)
}
  0x2e   :  { %65 = dma.hbm_to_vmem [thread:$0]  %s4159_s4, 256, %s60_s17, [#allocation9], %s3582_s11, %s3582_s11, %s3583_s12  }
  0x2f   :  { %3570 = dma.done.wait [#allocation3], 256  }
  0x30   :  { %3571 = vsyncadd [#allocation3], 4294967040 }
  0x31   :  { %3572 = dma.done.wait [#allocation6], 2944  }
  0x32   :  { %3573 = vsyncadd [#allocation6], 4294964352 }
  0x33   :  { %3574 = dma.done.wait [#allocation9], 256  }
  0x34   :  { %3575 = vsyncadd [#allocation9], 4294967040  ;;  %v3586_v0 = vmov 0.0   ;;  %vm3587_vm0 = vmmov 0   ;;  %v3376_v1 = vld [vmem:[#allocation5] sm:$0xff]   ;;  %v83_v2 = vld [vmem:[#allocation2] sm:$0xff]  ;;  %v91_v9 = vlaneseq }
  0x35   :  { %3027 = vmatprep.subr.bf16.mxu0 %v3586_v0  ;;  %3029 = vmatprep.mubr.msk.bf16.mxu0 %vm3587_vm0, %v3586_v0  ;;  %v84_v3 = vld [vmem:[#allocation2 + $0x8] sm:$0xff]  ;;  %vm101_vm1 = vcmask 130048   ;;  %v3377_v5 = vld [vmem:[#allocation7 + $0x8] sm:$0xff]   ;;  %v3378_v6 = vld [vmem:[#allocation7 + $0x18] sm:$0xff]   ;;  %vm182_vm2 = vcmask 261120   ;;  %vm349_vm3 = vcmask 64512  }
  0x36   :  { %3033 = vmatprep.subr.bf16.mxu1 %v3586_v0  ;;  %3037 = vmatprep.mubr.msk.bf16.mxu1 %vm3587_vm0, %v3586_v0  ;;  %v90_v4 = vpack.c.bf16 %v84_v3, %v83_v2  ;;  %v3379_v7 = vld [vmem:[#allocation7] sm:$0xff]   ;;  %v3380_v8 = vld [vmem:[#allocation7 + $0x10] sm:$0xff]   ;;  %v3676_v10 = vshrl.u32 %v91_v9, 7  ;;  %v3381_v20 = vld [vmem:[#allocation7 + $0x28] sm:$0xff]   ;;  %s3588_s2 = smov 120   ;;  %vm469_vm4 = vcmask 1043456  }
  0x37   :  { %3028 = vmatpush3.bf16.msra.mxu0 %v3376_v1  ;;  %3034 = vmatpush3.bf16.msra.mxu1 %v3377_v5  ;;  %v3679_v12 = vld [vmem:[#allocation8] sm:$0xff]  ;;  %v3382_v22 = vld [vmem:[#allocation7 + $0x20] sm:$0xff]   ;;  %s3589_s4 = smov 112   ;;  %s3590_s23 = smov 104   ;;  %vm1253_vm5 = vcmask 195584  }
  0x38   :  { %3041 = vmatprep.subr.bf16.mxu0 %v3586_v0  ;;  %3035 = vmatprep.subr.bf16.mxu1 %v3586_v0  ;;  %v93_v11 = vsub.s32 0, %v3676_v10  ;;  %v233_v23 = vsub.s32 2, %v3676_v10  ;;  %v168_v24 = vsub.s32 1, %v3676_v10  ;;  %v292_v30 = vsub.s32 3, %v3676_v10  ;;  %s3591_s24 = smov 16   ;;  %s3592_s25 = smov 24  }
  0x3a   :  { %3030 = vmatmul.mubr.msk.bf16.vlgmr.msra.gmra.mxu0 %vm101_vm1, %v90_v4  ;;  %v94_v14 = vrot.slane %v3679_v12, %v93_v11  ;;  %v234_v25 = vrot.slane %v3679_v12, %v233_v23  ;;  %v169_v26 = vrot.slane %v3679_v12, %v168_v24  ;;  %v293_v39 = vrot.slane %v3679_v12, %v292_v30 }
  0x3b   :  { %3045 = vmatprep.mubr.msk.bf16.mxu0 %vm3587_vm0, %v3586_v0  ;;  %3042 = vmatpush3.bf16.msra.mxu0 %v3378_v6 }
  0x3c   :  { %3043 = vmatprep.subr.bf16.mxu0 %v3586_v0  ;;  %3036 = vmatpush3.bf16.msra.mxu1 %v3379_v7 }
  0x3d   :  { %3049 = vmatprep.subr.bf16.mxu1 %v3586_v0 }
  0x3f   :  { %3044 = vmatpush3.bf16.msra.mxu0 %v3380_v8 }
  0x40   :  { %3057 = vmatprep.subr.bf16.mxu0 %v3586_v0 }
  0xfa   :  { %v139_v13 = vpop.f32.mrf.mxu0 }
  0xfb   :  { %v3684_v17 = vadd.f32 %v139_v13, %v94_v14 }
  0xfc   :  { %v3031_v15 = vpop.f32.mrf.mxu0 }
  0xfe   :  { %v142_v16 = vpop.f32.mrf.mxu0 }
  0xff   :  { %v3686_v18 = vadd.f32 %v142_v16, %v94_v14 }
 0x100   :  { %v3032_v19 = vpop.f32.mrf.mxu0 }
 0x101   :  { %v165_v21 = vpack.c.bf16 %v3686_v18, %v3684_v17 }
 0x103   :  { %3038 = vmatmul.mubr.msk.bf16.vlgmr.msra.gmra.mxu1 %vm182_vm2, %v165_v21  ;;  %3046 = vmatmul.mubr.msk.bf16.vlgmr.msra.gmra.mxu0 %vm182_vm2, %v165_v21 }
 0x104   :  { %3050 = vmatpush3.bf16.msra.mxu1 %v3381_v20  ;;  %3053 = vmatprep.mubr.msk.bf16.mxu1 %vm3587_vm0, %v3586_v0 }
 0x105   :  { %3051 = vmatprep.subr.bf16.mxu1 %v3586_v0  ;;  %3059 = vmatprep.mubr.msk.bf16.mxu0 %vm3587_vm0, %v3586_v0 }
 0x108   :  { %3052 = vmatpush3.bf16.msra.mxu1 %v3382_v22 }
 0x109   :  { %3063 = vmatprep.subr.bf16.mxu1 %v3586_v0 }
 0x10b   :  { %3054 = vmatmul.mubr.msk.bf16.vlgmr.msra.gmra.mxu1 %vm182_vm2, %v165_v21 }
 0x10c   :  { %3065 = vmatprep.mubr.msk.bf16.mxu1 %vm3587_vm0, %v3586_v0 }
 0x1c3   :  { %v220_v27 = vpop.f32.mrf.mxu1  ;;  %v281_v28 = vpop.f32.mrf.mxu0 }
 0x1c4   :  { %v282_v29 = vadd.f32 %v281_v28, %v234_v25  ;;  %v221_v33 = vadd.f32 %v220_v27, %v169_v26 }
 0x1c5   :  { %v3039_v31 = vpop.f32.mrf.mxu1  ;;  %v3047_v32 = vpop.f32.mrf.mxu0 }
 0x1c6   :  { %v3710_v34 = vpack.c.bf16 %v282_v29, %v282_v29  ;;  %v227_v42 = vmul.f32 0.35355338, %v221_v33 }
 0x1c7   :  { %v223_v35 = vpop.f32.mrf.mxu1  ;;  %v284_v36 = vpop.f32.mrf.mxu0 }
 0x1c8   :  { %v285_v37 = vadd.f32 %v284_v36, %v234_v25  ;;  %v354_v38 = vsel %vm349_vm3, %v3710_v34, 0  ;;  %v224_v43 = vadd.f32 %v223_v35, %v169_v26  ;;  %v3724_v49 = vpack.c.bf16 %v227_v42, %v227_v42 }
 0x1c9   :  { %v3040_v40 = vpop.f32.mrf.mxu1  ;;  %v3048_v41 = vpop.f32.mrf.mxu0  ;;  %3058 = vmatpush3.bf16.xpose.msra.mxu0 %v354_v38 }
 0x1ca   :  { %v3717_v44 = vpack.c.bf16 %v285_v37, %v285_v37  ;;  %3069 = vmatprep.subr.bf16.mxu0 %v3586_v0  ;;  %v228_v50 = vmul.f32 0.35355338, %v224_v43 }
 0x1cb   :  { %v340_v45 = vpop.f32.mrf.mxu1 }
 0x1cc   :  { %v341_v46 = vadd.f32 %v340_v45, %v293_v39  ;;  %615 = vrot.lane.b32.xlu1 %v3717_v44, %s3588_s2  ;;  %v400_v47 = vsel %vm349_vm3, %v3717_v44, 0  ;;  %v3735_v56 = vpack.c.bf16 %v228_v50, %v228_v50 }
 0x1cd   :  { %v3055_v48 = vpop.f32.mrf.mxu1  ;;  %3064 = vmatpush3.bf16.xpose.msra.mxu1 %v400_v47 }
 0x1ce   :  { %v3726_v51 = vpack.c.bf16 %v341_v46, %v341_v46  ;;  %3075 = vmatprep.subr.bf16.mxu1 %v3586_v0 }
 0x1cf   :  { %v343_v52 = vpop.f32.mrf.mxu1 }
 0x1d0   :  { %v344_v53 = vadd.f32 %v343_v52, %v293_v39  ;;  %3060 = vmatmul.mubr.msk.bf16.vlgmr.msra.gmra.mxu0 %vm349_vm3, %v3724_v49  ;;  %v471_v54 = vsel %vm469_vm4, %v3726_v51, 0 }
 0x1d1   :  { %v3056_v55 = vpop.f32.mrf.mxu1  ;;  %3070 = vmatpush3.bf16.msra.mxu0 %v471_v54  ;;  %3071 = vmatprep.mubr.msk.bf16.mxu0 %vm3587_vm0, %v3586_v0 }
 0x1d2   :  { %v3737_v57 = vpack.c.bf16 %v344_v53, %v344_v53  ;;  %3081 = vmatprep.subr.bf16.mxu0 %v3586_v0 }
 0x1d4   :  { %3066 = vmatmul.mubr.msk.bf16.vlgmr.msra.gmra.mxu1 %vm349_vm3, %v3735_v56  ;;  %v517_v58 = vsel %vm469_vm4, %v3737_v57, 0 }
 0x1d5   :  { %3076 = vmatpush3.bf16.msra.mxu1 %v517_v58  ;;  %3077 = vmatprep.mubr.msk.bf16.mxu1 %vm3587_vm0, %v3586_v0 }
 0x1d6   :  { %3087 = vmatprep.subr.bf16.mxu1 %v3586_v0 }
 0x23e   :  { %v616_v21 = vpop.permute.xlu1 %615 }
 0x23f   :  { %v621_v36 = vsel %vm349_vm3, %v616_v21, 0 }
 0x290   :  { %v390_v59 = vpop.f32.mrf.mxu0 }
 0x291   :  { %v442_v60 = vsel %vm349_vm3, %v390_v59, -inf }
 0x292   :  { %443 = vmax.xlane.f32.xlu0 %v442_v60  ;;  %v3061_v61 = vpop.f32.mrf.mxu0 }
 0x294   :  { %v393_v62 = vpop.f32.mrf.mxu0  ;;  %v436_v63 = vpop.f32.mrf.mxu1 }
 0x295   :  { %v445_v1 = vsel %vm349_vm3, %v436_v63, -inf }
 0x296   :  { %v3067_v2 = vpop.f32.mrf.mxu1  ;;  %446 = vmax.xlane.f32.xlu0 %v445_v1  ;;  %v3062_v3 = vpop.f32.mrf.mxu0 }
 0x298   :  { %v439_v4 = vpop.f32.mrf.mxu1 }
 0x29a   :  { %v3068_v5 = vpop.f32.mrf.mxu1 }
 0x2ac   :  { %563 = vrot.lane.b32.xlu0 %v3710_v34, %s3588_s2 }
 0x31b   :  { %v444_v6 = vpop.xlane.xlu0 %443 }
 0x31c   :  { %v448_v7 = vsub.f32 %v390_v59, %v444_v6 }
 0x31e   :  { %v450_v8 = vmul.f32 1.442695, %v448_v7 }
 0x31f   :  { %v447_v9 = vpop.xlane.xlu0 %446 }
 0x320   :  { %3401 = vpow2.f32 %v450_v8  ;;  %v449_v13 = vsub.f32 %v436_v63, %v447_v9 }
 0x322   :  { %v452_v14 = vmul.f32 1.442695, %v449_v13 }
 0x323   :  { %v564_v28 = vpop.permute.xlu0 %563 }
 0x324   :  { %3403 = vpow2.f32 %v452_v14  ;;  %v569_v32 = vsel %vm349_vm3, %v564_v28, 0 }
 0x32d   :  { %v3402_v15 = vpop.eup %3401 }
 0x32e   :  { %v454_v16 = vsel %vm349_vm3, %v3402_v15, 0.0 }
 0x32f   :  { %455 = vadd.xlane.f32.xlu1 %v454_v16 }
 0x331   :  { %v3404_v19 = vpop.eup %3403 }
 0x332   :  { %v457_v20 = vsel %vm349_vm3, %v3404_v19, 0.0 }
 0x333   :  { %458 = vadd.xlane.f32.xlu1 %v457_v20 }
 0x344   :  { %560 = vrot.lane.b32.xlu1 %v3724_v49, %s3588_s2 }
 0x348   :  { %612 = vrot.lane.b32.xlu1 %v3735_v56, %s3588_s2 }
 0x3b8   :  { %v456_v22 = vpop.xlane.xlu1 %455 }
 0x3b9   :  { %3405 = vrcp.f32 %v456_v22 }
 0x3bc   :  { %v459_v25 = vpop.xlane.xlu1 %458 }
 0x3bd   :  { %3407 = vrcp.f32 %v459_v25 }
 0x3c0   :  { %v561_v37 = vpop.permute.xlu1 %560 }
 0x3c4   :  { %v613_v38 = vpop.permute.xlu1 %612 }
 0x3c6   :  { %v3406_v26 = vpop.eup %3405 }
 0x3c7   :  { %v462_v27 = vmul.f32 %v3406_v26, %v3402_v15 }
 0x3c9   :  { %v464_v29 = vpack.c.bf16 %v462_v27, %v462_v27 }
 0x3ca   :  { %v3408_v31 = vpop.eup %3407 }
 0x3cb   :  { %3072 = vmatmul.mubr.msk.bf16.vlgmr.msra.gmra.mxu0 %vm349_vm3, %v464_v29  ;;  %v463_v33 = vmul.f32 %v3408_v31, %v3404_v19 }
 0x3cc   :  { %3082 = vmatpush3.bf16.xpose.msra.mxu0 %v569_v32  ;;  %3083 = vmatprep.mubr.msk.bf16.mxu0 %vm3587_vm0, %v3586_v0 }
 0x3cd   :  { %v465_v35 = vpack.c.bf16 %v463_v33, %v463_v33  ;;  %3093 = vmatprep.subr.bf16.mxu0 %v3586_v0 }
 0x3cf   :  { %3078 = vmatmul.mubr.msk.bf16.vlgmr.msra.gmra.mxu1 %vm349_vm3, %v465_v35 }
 0x3d0   :  { %3088 = vmatpush3.bf16.xpose.msra.mxu1 %v621_v36  ;;  %3089 = vmatprep.mubr.msk.bf16.mxu1 %vm3587_vm0, %v3586_v0 }
 0x3d1   :  { %3099 = vmatprep.subr.bf16.mxu1 %v3586_v0 }
 0x3d3   :  { %3084 = vmatmul.mubr.msk.bf16.vlgmr.msra.gmra.mxu0 %vm349_vm3, %v561_v37 }
 0x3d4   :  { %3095 = vmatprep.mubr.msk.bf16.mxu0 %vm3587_vm0, %v3586_v0 }
 0x3d7   :  { %3090 = vmatmul.mubr.msk.bf16.vlgmr.msra.gmra.mxu1 %vm349_vm3, %v613_v38 }
 0x3d8   :  { %3101 = vmatprep.mubr.msk.bf16.mxu1 %vm3587_vm0, %v3586_v0 }
 0x48b   :  { %v3773_v39 = vpop.f32.mrf.mxu0 }
 0x48d   :  { %v3073_v40 = vpop.f32.mrf.mxu0 }
 0x48f   :  { %v510_v41 = vpop.f32.mrf.mxu0  ;;  %v3775_v42 = vpop.f32.mrf.mxu1 }
 0x491   :  { %v3074_v43 = vpop.f32.mrf.mxu0  ;;  %v3079_v45 = vpop.f32.mrf.mxu1 }
 0x493   :  { %v556_v46 = vpop.f32.mrf.mxu1  ;;  %v605_v47 = vpop.f32.mrf.mxu0 }
 0x494   :  { %v663_v48 = vsel %vm349_vm3, %v605_v47, -inf }
 0x495   :  { %v3080_v50 = vpop.f32.mrf.mxu1  ;;  %664 = vmax.xlane.f32.xlu0 %v663_v48  ;;  %v3085_v52 = vpop.f32.mrf.mxu0 }
 0x497   :  { %v608_v53 = vpop.f32.mrf.mxu0  ;;  %v657_v54 = vpop.f32.mrf.mxu1 }
 0x498   :  { %v666_v55 = vsel %vm349_vm3, %v657_v54, -inf }
 0x499   :  { %667 = vmax.xlane.f32.xlu1 %v666_v55  ;;  %v3086_v58 = vpop.f32.mrf.mxu0  ;;  %v3091_v59 = vpop.f32.mrf.mxu1 }
 0x49b   :  { %v660_v60 = vpop.f32.mrf.mxu1 }
 0x49d   :  { %v3092_v61 = vpop.f32.mrf.mxu1 }
 0x4aa   :  { %737 = vrot.lane.b32.xlu1 %v3737_v57, %s3588_s2 }
 0x4ae   :  { %787 = vrot.lane.b32.xlu1 %v3710_v34, %s3589_s4 }
 0x4b2   :  { %837 = vrot.lane.b32.xlu1 %v3717_v44, %s3589_s4 }
 0x4b6   :  { %835 = vrot.lane.b32.xlu1 %v3735_v56, %s3589_s4 }
 0x51e   :  { %v665_v62 = vpop.xlane.xlu0 %664 }
 0x51f   :  { %v669_v63 = vsub.f32 %v605_v47, %v665_v62 }
 0x521   :  { %v671_v1 = vmul.f32 1.442695, %v669_v63 }
 0x522   :  { %v668_v2 = vpop.xlane.xlu1 %667 }
 0x523   :  { %3409 = vpow2.f32 %v671_v1  ;;  %v670_v3 = vsub.f32 %v657_v54, %v668_v2 }
 0x525   :  { %v673_v4 = vmul.f32 1.442695, %v670_v3 }
 0x526   :  { %v738_v5 = vpop.permute.xlu1 %737 }
 0x527   :  { %3411 = vpow2.f32 %v673_v4  ;;  %v743_v6 = vsel %vm469_vm4, %v738_v5, 0 }
 0x528   :  { %3100 = vmatpush3.bf16.msra.mxu1 %v743_v6 }
 0x529   :  { %3111 = vmatprep.subr.bf16.mxu1 %v3586_v0 }
 0x52a   :  { %v788_v21 = vpop.permute.xlu1 %787 }
 0x52b   :  { %v793_v27 = vsel %vm349_vm3, %v788_v21, 0 }
 0x52e   :  { %v838_v29 = vpop.permute.xlu1 %837 }
 0x52f   :  { %v843_v32 = vsel %vm349_vm3, %v838_v29, 0 }
 0x530   :  { %v3410_v7 = vpop.eup %3409 }
 0x531   :  { %v675_v8 = vsel %vm349_vm3, %v3410_v7, 0.0 }
 0x532   :  { %676 = vadd.xlane.f32.xlu0 %v675_v8  ;;  %v836_v35 = vpop.permute.xlu1 %835 }
 0x534   :  { %v3412_v9 = vpop.eup %3411 }
 0x535   :  { %v678_v13 = vsel %vm349_vm3, %v3412_v9, 0.0 }
 0x536   :  { %679 = vadd.xlane.f32.xlu0 %v678_v13 }
 0x54c   :  { %688 = vrot.lane.b32.xlu0 %v3726_v51, %s3588_s2 }
 0x550   :  { %785 = vrot.lane.b32.xlu0 %v3724_v49, %s3589_s4 }
 0x5bb   :  { %v677_v14 = vpop.xlane.xlu0 %676 }
 0x5bc   :  { %3413 = vrcp.f32 %v677_v14 }
 0x5bf   :  { %v680_v15 = vpop.xlane.xlu0 %679 }
 0x5c0   :  { %3415 = vrcp.f32 %v680_v15 }
 0x5c3   :  { %v689_v16 = vpop.permute.xlu0 %688 }
 0x5c4   :  { %v694_v19 = vsel %vm469_vm4, %v689_v16, 0 }
 0x5c5   :  { %3094 = vmatpush3.bf16.msra.mxu0 %v694_v19 }
 0x5c6   :  { %3105 = vmatprep.subr.bf16.mxu0 %v3586_v0 }
 0x5c7   :  { %v786_v33 = vpop.permute.xlu0 %785 }
 0x5c9   :  { %v3414_v20 = vpop.eup %3413 }
 0x5ca   :  { %v683_v22 = vmul.f32 %v3414_v20, %v3410_v7 }
 0x5cc   :  { %v685_v25 = vpack.c.bf16 %v683_v22, %v683_v22 }
 0x5cd   :  { %v3416_v26 = vpop.eup %3415 }
 0x5ce   :  { %3096 = vmatmul.mubr.msk.bf16.vlgmr.msra.gmra.mxu0 %vm349_vm3, %v685_v25  ;;  %v684_v28 = vmul.f32 %v3416_v26, %v3412_v9 }
 0x5cf   :  { %3106 = vmatpush3.bf16.xpose.msra.mxu0 %v793_v27  ;;  %3107 = vmatprep.mubr.msk.bf16.mxu0 %vm3587_vm0, %v3586_v0 }
 0x5d0   :  { %v686_v31 = vpack.c.bf16 %v684_v28, %v684_v28  ;;  %3117 = vmatprep.subr.bf16.mxu0 %v3586_v0 }
 0x5d2   :  { %3102 = vmatmul.mubr.msk.bf16.vlgmr.msra.gmra.mxu1 %vm349_vm3, %v686_v31 }
 0x5d3   :  { %3112 = vmatpush3.bf16.xpose.msra.mxu1 %v843_v32  ;;  %3113 = vmatprep.mubr.msk.bf16.mxu1 %vm3587_vm0, %v3586_v0 }
 0x5d4   :  { %3123 = vmatprep.subr.bf16.mxu1 %v3586_v0 }
 0x5d6   :  { %3108 = vmatmul.mubr.msk.bf16.vlgmr.msra.gmra.mxu0 %vm349_vm3, %v786_v33 }
 0x5d7   :  { %3119 = vmatprep.mubr.msk.bf16.mxu0 %vm3587_vm0, %v3586_v0 }
 0x5da   :  { %3114 = vmatmul.mubr.msk.bf16.vlgmr.msra.gmra.mxu1 %vm349_vm3, %v836_v35 }
 0x5db   :  { %3125 = vmatprep.mubr.msk.bf16.mxu1 %vm3587_vm0, %v3586_v0 }
 0x68e   :  { %v3813_v36 = vpop.f32.mrf.mxu0 }
 0x690   :  { %v3097_v37 = vpop.f32.mrf.mxu0 }
 0x692   :  { %v733_v38 = vpop.f32.mrf.mxu0  ;;  %v3815_v40 = vpop.f32.mrf.mxu1 }
 0x693   :  { %v3341_v41 = vpack.i.bf16 %v3815_v40, %v3813_v36 }
 0x694   :  { %v3098_v43 = vpop.f32.mrf.mxu0  ;;  %v3103_v45 = vpop.f32.mrf.mxu1 }
 0x696   :  { %v782_v46 = vpop.f32.mrf.mxu1  ;;  %v829_v47 = vpop.f32.mrf.mxu0 }
 0x697   :  { %v885_v48 = vsel %vm349_vm3, %v829_v47, -inf }
 0x698   :  { %v3104_v50 = vpop.f32.mrf.mxu1  ;;  %886 = vmax.xlane.f32.xlu0 %v885_v48  ;;  %v3109_v52 = vpop.f32.mrf.mxu0 }
 0x69a   :  { %v832_v53 = vpop.f32.mrf.mxu0  ;;  %v879_v54 = vpop.f32.mrf.mxu1 }
 0x69b   :  { %v888_v55 = vsel %vm349_vm3, %v879_v54, -inf }
 0x69c   :  { %889 = vmax.xlane.f32.xlu1 %v888_v55  ;;  %v3110_v58 = vpop.f32.mrf.mxu0  ;;  %v3115_v59 = vpop.f32.mrf.mxu1 }
 0x69e   :  { %v882_v60 = vpop.f32.mrf.mxu1 }
 0x6a0   :  { %v3116_v61 = vpop.f32.mrf.mxu1 }
 0x6ad   :  { %957 = vrot.lane.b32.xlu1 %v3737_v57, %s3589_s4 }
 0x6b1   :  { %1007 = vrot.lane.b32.xlu1 %v3710_v34, %s3590_s23 }
 0x6b5   :  { %1057 = vrot.lane.b32.xlu1 %v3717_v44, %s3590_s23 }
 0x6b9   :  { %1055 = vrot.lane.b32.xlu1 %v3735_v56, %s3590_s23 }
 0x721   :  { %v887_v62 = vpop.xlane.xlu0 %886 }
 0x722   :  { %v891_v63 = vsub.f32 %v829_v47, %v887_v62 }
 0x724   :  { %v893_v1 = vmul.f32 1.442695, %v891_v63 }
 0x725   :  { %v890_v2 = vpop.xlane.xlu1 %889 }
 0x726   :  { %3417 = vpow2.f32 %v893_v1  ;;  %v892_v3 = vsub.f32 %v879_v54, %v890_v2 }
 0x728   :  { %v895_v4 = vmul.f32 1.442695, %v892_v3 }
 0x729   :  { %v958_v5 = vpop.permute.xlu1 %957 }
 0x72a   :  { %3419 = vpow2.f32 %v895_v4  ;;  %v963_v6 = vsel %vm469_vm4, %v958_v5, 0 }
 0x72b   :  { %3124 = vmatpush3.bf16.msra.mxu1 %v963_v6 }
 0x72c   :  { %3135 = vmatprep.subr.bf16.mxu1 %v3586_v0 }
 0x72d   :  { %v1008_v16 = vpop.permute.xlu1 %1007 }
 0x72e   :  { %v1013_v22 = vsel %vm349_vm3, %v1008_v16, 0  ;;  %v3384_v16 = vld [vmem:[#allocation7 + $0x30] sm:$0xff]  }
 0x731   :  { %v1058_v25 = vpop.permute.xlu1 %1057 }
 0x732   :  { %v1063_v27 = vsel %vm349_vm3, %v1058_v25, 0 }
 0x733   :  { %v3418_v34 = vpop.eup %3417 }
 0x734   :  { %v897_v44 = vsel %vm349_vm3, %v3418_v34, 0.0 }
 0x735   :  { %898 = vadd.xlane.f32.xlu0 %v897_v44  ;;  %v1056_v29 = vpop.permute.xlu1 %1055 }
 0x737   :  { %v3420_v7 = vpop.eup %3419 }
 0x738   :  { %v900_v56 = vsel %vm349_vm3, %v3420_v7, 0.0 }
 0x739   :  { %901 = vadd.xlane.f32.xlu0 %v900_v56 }
 0x74f   :  { %909 = vrot.lane.b32.xlu0 %v3726_v51, %s3589_s4 }
 0x753   :  { %1005 = vrot.lane.b32.xlu0 %v3724_v49, %s3590_s23 }
 0x7be   :  { %v899_v8 = vpop.xlane.xlu0 %898 }
 0x7bf   :  { %3421 = vrcp.f32 %v899_v8 }
 0x7c2   :  { %v902_v9 = vpop.xlane.xlu0 %901 }
 0x7c3   :  { %3423 = vrcp.f32 %v902_v9 }
 0x7c6   :  { %v910_v13 = vpop.permute.xlu0 %909 }
 0x7c7   :  { %v915_v14 = vsel %vm469_vm4, %v910_v13, 0 }
 0x7c8   :  { %3118 = vmatpush3.bf16.msra.mxu0 %v915_v14 }
 0x7c9   :  { %3129 = vmatprep.subr.bf16.mxu0 %v3586_v0 }
 0x7ca   :  { %v1006_v28 = vpop.permute.xlu0 %1005 }
 0x7cc   :  { %v3422_v15 = vpop.eup %3421 }
 0x7cd   :  { %v905_v19 = vmul.f32 %v3422_v15, %v3418_v34  ;;  %v3383_v15 = vld [vmem:[#allocation7 + $0x38] sm:$0xff]  }
 0x7cf   :  { %v907_v20 = vpack.c.bf16 %v905_v19, %v905_v19 }
 0x7d0   :  { %v3424_v21 = vpop.eup %3423 }
 0x7d1   :  { %3120 = vmatmul.mubr.msk.bf16.vlgmr.msra.gmra.mxu0 %vm349_vm3, %v907_v20  ;;  %v906_v49 = vmul.f32 %v3424_v21, %v3420_v7 }
 0x7d2   :  { %3130 = vmatpush3.bf16.xpose.msra.mxu0 %v1013_v22  ;;  %3131 = vmatprep.mubr.msk.bf16.mxu0 %vm3587_vm0, %v3586_v0 }
 0x7d3   :  { %v908_v26 = vpack.c.bf16 %v906_v49, %v906_v49  ;;  %3141 = vmatprep.subr.bf16.mxu0 %v3586_v0 }
 0x7d5   :  { %3126 = vmatmul.mubr.msk.bf16.vlgmr.msra.gmra.mxu1 %vm349_vm3, %v908_v26 }
 0x7d6   :  { %3136 = vmatpush3.bf16.xpose.msra.mxu1 %v1063_v27  ;;  %3137 = vmatprep.mubr.msk.bf16.mxu1 %vm3587_vm0, %v3586_v0 }
 0x7d7   :  { %3147 = vmatprep.subr.bf16.mxu1 %v3586_v0 }
 0x7d9   :  { %3132 = vmatmul.mubr.msk.bf16.vlgmr.msra.gmra.mxu0 %vm349_vm3, %v1006_v28 }
 0x7da   :  { %3143 = vmatprep.mubr.msk.bf16.mxu0 %vm3587_vm0, %v3586_v0 }
 0x7dd   :  { %3138 = vmatmul.mubr.msk.bf16.vlgmr.msra.gmra.mxu1 %vm349_vm3, %v1056_v29 }
 0x7de   :  { %3149 = vmatprep.mubr.msk.bf16.mxu1 %vm3587_vm0, %v3586_v0 }
 0x891   :  { %v951_v31 = vpop.f32.mrf.mxu0 }
 0x893   :  { %v3121_v32 = vpop.f32.mrf.mxu0 }
 0x895   :  { %v954_v33 = vpop.f32.mrf.mxu0  ;;  %v999_v35 = vpop.f32.mrf.mxu1 }
 0x896   :  { %v3346_v60 = vpack.i.bf16 %v999_v35, %v951_v31 }
 0x897   :  { %v3122_v37 = vpop.f32.mrf.mxu0  ;;  %v3127_v38 = vpop.f32.mrf.mxu1 }
 0x899   :  { %v1002_v43 = vpop.f32.mrf.mxu1  ;;  %v1049_v45 = vpop.f32.mrf.mxu0 }
 0x89a   :  { %v1105_v46 = vsel %vm349_vm3, %v1049_v45, -inf }
 0x89b   :  { %v3128_v47 = vpop.f32.mrf.mxu1  ;;  %1106 = vmax.xlane.f32.xlu0 %v1105_v46  ;;  %v3133_v48 = vpop.f32.mrf.mxu0 }
 0x89d   :  { %v1052_v50 = vpop.f32.mrf.mxu0  ;;  %v1099_v52 = vpop.f32.mrf.mxu1 }
 0x89e   :  { %v1108_v53 = vsel %vm349_vm3, %v1099_v52, -inf }
 0x89f   :  { %1109 = vmax.xlane.f32.xlu1 %v1108_v53  ;;  %v3134_v54 = vpop.f32.mrf.mxu0  ;;  %v3139_v55 = vpop.f32.mrf.mxu1 }
 0x8a1   :  { %v1102_v58 = vpop.f32.mrf.mxu1 }
 0x8a3   :  { %v3140_v59 = vpop.f32.mrf.mxu1 }
 0x8b0   :  { %1177 = vrot.lane.b32.xlu1 %v3737_v57, %s3590_s23 }
 0x8b4   :  { %3342 = vrot.lane.b32.xlu1 %v3341_v41, %s3583_s12 }
 0x8b8   :  { %3347 = vrot.lane.b32.xlu1 %v3346_v60, %s3591_s24 }
 0x924   :  { %v1107_v61 = vpop.xlane.xlu0 %1106 }
 0x925   :  { %v1111_v62 = vsub.f32 %v1049_v45, %v1107_v61 }
 0x927   :  { %v1113_v63 = vmul.f32 1.442695, %v1111_v62 }
 0x928   :  { %v1110_v1 = vpop.xlane.xlu1 %1109 }
 0x929   :  { %3425 = vpow2.f32 %v1113_v63  ;;  %v1112_v2 = vsub.f32 %v1099_v52, %v1110_v1 }
 0x92b   :  { %v1115_v3 = vmul.f32 1.442695, %v1112_v2 }
 0x92c   :  { %v1178_v4 = vpop.permute.xlu1 %1177 }
 0x92d   :  { %3427 = vpow2.f32 %v1115_v3  ;;  %v1183_v57 = vsel %vm469_vm4, %v1178_v4, 0  ;;  %v3901_v4 = vld [vmem:[%s4161_s6] sm:$0xff] }
 0x92e   :  { %3148 = vmatpush3.bf16.msra.mxu1 %v1183_v57  ;;  %v3593_v57 = vmov 0  }
 0x92f   :  { %3161 = vmatprep.subr.bf16.mxu1 %v3586_v0  ;;  %3356 = vset.pattern.permute.xlu1 %v3593_v57 }
 0x930   :  { %v3343_v29 = vpop.permute.xlu1 %3342 }
 0x931   :  { %v3345_v32 = vunpack.i.h.bf16 %v3343_v29  ;;  %v3344_v33 = vunpack.i.l.bf16 %v3343_v29 }
 0x933   :  { %v1250_v43 = vsel %vm349_vm3, %v3775_v42, %v3345_v32  ;;  %v1249_v45 = vsel %vm349_vm3, %v3773_v39, %v3344_v33  ;;  %v1259_v42 = vsub.s32 4, %v3676_v10  ;;  %v3388_v32 = vld [vmem:[#allocation7 + $0x50] sm:$0xff]   ;;  %v1365_v33 = vsub.s32 5, %v3676_v10 }
 0x934   :  { %v3348_v31 = vpop.permute.xlu1 %3347 }
 0x935   :  { %v3350_v35 = vunpack.i.h.bf16 %v3348_v31  ;;  %v3349_v37 = vunpack.i.l.bf16 %v3348_v31  ;;  %v1260_v39 = vrot.slane %v3679_v12, %v1259_v42  ;;  %v3387_v31 = vld [vmem:[#allocation7 + $0x58] sm:$0xff]  }
 0x936   :  { %v3426_v36 = vpop.eup %3425 }
 0x937   :  { %v1117_v40 = vsel %vm349_vm3, %v3426_v36, 0.0  ;;  %v1252_v48 = vsel %vm101_vm1, %v1250_v43, %v3350_v35  ;;  %v1251_v50 = vsel %vm101_vm1, %v1249_v45, %v3349_v37  ;;  %v1366_v35 = vrot.slane %v3679_v12, %v1365_v33 }
 0x938   :  { %1118 = vadd.xlane.f32.xlu0 %v1117_v40 }
 0x93a   :  { %v3428_v41 = vpop.eup %3427 }
 0x93b   :  { %v1120_v5 = vsel %vm349_vm3, %v3428_v41, 0.0 }
 0x93c   :  { %1121 = vadd.xlane.f32.xlu0 %v1120_v5 }
 0x952   :  { %1129 = vrot.lane.b32.xlu0 %v3726_v51, %s3590_s23 }
 0x9c1   :  { %v1119_v6 = vpop.xlane.xlu0 %1118 }
 0x9c2   :  { %3429 = vrcp.f32 %v1119_v6 }
 0x9c5   :  { %v1122_v34 = vpop.xlane.xlu0 %1121 }
 0x9c6   :  { %3431 = vrcp.f32 %v1122_v34 }
 0x9c9   :  { %v1130_v44 = vpop.permute.xlu0 %1129 }
 0x9ca   :  { %v1135_v7 = vsel %vm469_vm4, %v1130_v44, 0 }
 0x9cb   :  { %3142 = vmatpush3.bf16.msra.mxu0 %v1135_v7 }
 0x9cc   :  { %3153 = vmatprep.subr.bf16.mxu0 %v3586_v0 }
 0x9cf   :  { %v3430_v56 = vpop.eup %3429 }
 0x9d0   :  { %v1125_v8 = vmul.f32 %v3430_v56, %v3426_v36  ;;  %v3594_v36 = vmov 1  }
 0x9d1   :  { %3357 = vset.pattern.permute.xlu0 %v3594_v36 }
 0x9d2   :  { %v1127_v9 = vpack.c.bf16 %v1125_v8, %v1125_v8  ;;  %v3385_v8 = vld [vmem:[#allocation7 + $0x48] sm:$0xff]  }
 0x9d3   :  { %v3432_v13 = vpop.eup %3431 }
 0x9d4   :  { %3144 = vmatmul.mubr.msk.bf16.vlgmr.msra.gmra.mxu0 %vm349_vm3, %v1127_v9  ;;  %v1126_v14 = vmul.f32 %v3432_v13, %v3428_v41  ;;  %v3386_v9 = vld [vmem:[#allocation7 + $0x40] sm:$0xff]  }
 0x9d5   :  { %3157 = vmatprep.mubr.msk.bf16.mxu0 %vm3587_vm0, %v3586_v0  ;;  %3154 = vmatpush3.bf16.msra.mxu0 %v3383_v15 }
 0x9d6   :  { %v1128_v51 = vpack.c.bf16 %v1126_v14, %v1126_v14  ;;  %3155 = vmatprep.subr.bf16.mxu0 %v3586_v0 }
 0x9d8   :  { %3150 = vmatmul.mubr.msk.bf16.vlgmr.msra.gmra.mxu1 %vm349_vm3, %v1128_v51 }
 0x9d9   :  { %3165 = vmatprep.mubr.msk.bf16.mxu1 %vm3587_vm0, %v3586_v0  ;;  %3156 = vmatpush3.bf16.msra.mxu0 %v3384_v16 }
 0x9da   :  { %3169 = vmatprep.subr.bf16.mxu0 %v3586_v0  ;;  %3162 = vmatpush3.bf16.msra.mxu1 %v3385_v8  ;;  %v3392_v8 = vld [vmem:[#allocation7 + $0x70] sm:$0xff]  }
 0x9db   :  { %3163 = vmatprep.subr.bf16.mxu1 %v3586_v0 }
 0x9de   :  { %3164 = vmatpush3.bf16.msra.mxu1 %v3386_v9 }
 0x9df   :  { %3177 = vmatprep.subr.bf16.mxu1 %v3586_v0 }
 0xa94   :  { %v1171_v19 = vpop.f32.mrf.mxu0 }
 0xa96   :  { %v3145_v20 = vpop.f32.mrf.mxu0 }
 0xa98   :  { %v1174_v21 = vpop.f32.mrf.mxu0  ;;  %v1219_v22 = vpop.f32.mrf.mxu1 }
 0xa99   :  { %v3351_v49 = vpack.i.bf16 %v1219_v22, %v1171_v19 }
 0xa9a   :  { %v3146_v25 = vpop.f32.mrf.mxu0  ;;  %v3151_v26 = vpop.f32.mrf.mxu1 }
 0xa9b   :  { %3352 = vrot.lane.b32.xlu0 %v3351_v49, %s3592_s25 }
 0xa9c   :  { %v1222_v27 = vpop.f32.mrf.mxu1 }
 0xa9e   :  { %v3152_v28 = vpop.f32.mrf.mxu1 }
 0xb0d   :  { %v3353_v38 = vpop.permute.xlu0 %3352 }
 0xb0e   :  { %v3355_v46 = vunpack.i.h.bf16 %v3353_v38  ;;  %v3354_v47 = vunpack.i.l.bf16 %v3353_v38 }
 0xb10   :  { %v1255_v52 = vsel %vm1253_vm5, %v1252_v48, %v3355_v46  ;;  %v1254_v53 = vsel %vm1253_vm5, %v1251_v50, %v3354_v47 }
 0xb11   :  { %v1256_v54 = vpack.c.bf16 %v1255_v52, %v1254_v53  ;;  %v3595_v53 = vmov 2  }
 0xb13   :  { %3158 = vmatmul.mubr.msk.bf16.vlgmr.msra.gmra.mxu0 %vm182_vm2, %v1256_v54  ;;  %v1433_v54 = vsub.s32 6, %v3676_v10 }
 0xb14   :  { %3173 = vmatprep.mubr.msk.bf16.mxu0 %vm3587_vm0, %v3586_v0  ;;  %3170 = vmatpush3.bf16.msra.mxu0 %v3387_v31  ;;  %v3942_v31 = vld [vmem:[#allocation8 + $0x8] sm:$0xf] }
 0xb15   :  { %3171 = vmatprep.subr.bf16.mxu0 %v3586_v0  ;;  %v1434_v42 = vrot.slane %v3679_v12, %v1433_v54  ;;  %v1617_v33 = vrot.slane %v3942_v31, %v93_v11  ;;  %v1676_v11 = vrot.slane %v3942_v31, %v168_v24 }
 0xb18   :  { %3172 = vmatpush3.bf16.msra.mxu0 %v3388_v32  ;;  %v1552_v32 = vsub.s32 7, %v3676_v10 }
 0xb19   :  { %3185 = vmatprep.subr.bf16.mxu0 %v3586_v0 }
 0xbd3   :  { %v1310_v55 = vpop.f32.mrf.mxu0 }
 0xbd4   :  { %v1311_v58 = vadd.f32 %v1310_v55, %v1260_v39 }
 0xbd5   :  { %v3159_v59 = vpop.f32.mrf.mxu0 }
 0xbd6   :  { %v1317_v60 = vadd.f32 %v1311_v58, %v3684_v17 }
 0xbd7   :  { %v1313_v61 = vpop.f32.mrf.mxu0 }
 0xbd8   :  { %v1314_v62 = vadd.f32 %v1313_v61, %v1260_v39  ;;  %v1319_v63 = vsel %vm182_vm2, %v1317_v60, 0.0 }
 0xbd9   :  { %1320 = vadd.xlane.f32.xlu1 %v1319_v63  ;;  %v3160_v1 = vpop.f32.mrf.mxu0 }
 0xbda   :  { %v1318_v2 = vadd.f32 %v1314_v62, %v3686_v18 }
 0xbdc   :  { %v1322_v3 = vsel %vm182_vm2, %v1318_v2, 0.0 }
 0xbdd   :  { %1323 = vadd.xlane.f32.xlu0 %v1322_v3  ;;  %v3596_v3 = vmov 3  }
 0xbea   :  { %1346 = vperm.xlu1 %3356, %v3901_v4  }
 0xbee   :  { %3358 = vset.pattern.permute.xlu1 %v3595_v53 }
 0xc62   :  { %v1321_v17 = vpop.xlane.xlu1 %1320 }
 0xc66   :  { %v1324_v40 = vpop.xlane.xlu0 %1323  ;;  %v1347_v20 = vpop.permute.xlu1 %1346 }
 0xc67   :  { %v1325_v41 = vadd.f32 %v1324_v40, %v1321_v17 }
 0xc69   :  { %v1327_v5 = vmul.f32 0.015625, %v1325_v41 }
 0xc6b   :  { %v1328_v6 = vsub.f32 %v1317_v60, %v1327_v5  ;;  %v1329_v18 = vsub.f32 %v1318_v2, %v1327_v5 }
 0xc6d   :  { %v1330_v34 = vmul.f32 %v1328_v6, %v1328_v6  ;;  %v1331_v7 = vmul.f32 %v1329_v18, %v1329_v18 }
 0xc6f   :  { %v1332_v44 = vsel %vm182_vm2, %v1330_v34, 0.0  ;;  %v1335_v56 = vsel %vm182_vm2, %v1331_v7, 0.0  ;;  %v3390_v7 = vld [vmem:[#allocation7 + $0x78] sm:$0xff]  }
 0xc70   :  { %1333 = vadd.xlane.f32.xlu0 %v1332_v44  ;;  %v3389_v44 = vld [vmem:[#allocation7 + $0x68] sm:$0xff]  }
 0xc74   :  { %1336 = vadd.xlane.f32.xlu0 %v1335_v56  ;;  %v3391_v56 = vld [vmem:[#allocation7 + $0x60] sm:$0xff]  }
 0xc8a   :  { %1352 = vperm.xlu0 %3357, %v3901_v4  }
 0xc8e   :  { %3375 = vset.pattern.permute.xlu0 %v3596_v3 }
 0xcf9   :  { %v1334_v13 = vpop.xlane.xlu0 %1333 }
 0xcfd   :  { %v1337_v14 = vpop.xlane.xlu0 %1336 }
 0xcfe   :  { %v1338_v51 = vadd.f32 %v1337_v14, %v1334_v13 }
 0xd00   :  { %v1339_v15 = vmul.f32 0.015625, %v1338_v51 }
 0xd02   :  { %v1340_v16 = vadd.f32 1e-05, %v1339_v15 }
 0xd04   :  { %3433 = vrsqrt.f32 %v1340_v16 }
 0xd05   :  { %v1353_v49 = vpop.permute.xlu0 %1352 }
 0xd11   :  { %v3434_v19 = vpop.eup %3433 }
 0xd12   :  { %v1342_v21 = vmul.f32 %v3434_v19, %v1328_v6  ;;  %v1343_v22 = vmul.f32 %v3434_v19, %v1329_v18 }
 0xd14   :  { %v1349_v25 = vmul.f32 %v1347_v20, %v1342_v21  ;;  %v1350_v26 = vmul.f32 %v1347_v20, %v1343_v22 }
 0xd16   :  { %v1355_v27 = vadd.f32 %v1353_v49, %v1349_v25  ;;  %v1356_v28 = vadd.f32 %v1353_v49, %v1350_v26 }
 0xd18   :  { %v1362_v29 = vpack.c.bf16 %v1356_v28, %v1355_v27 }
 0xd1a   :  { %3166 = vmatmul.mubr.msk.bf16.vlgmr.msra.gmra.mxu1 %vm182_vm2, %v1362_v29  ;;  %v3394_v29 = vld [vmem:[#allocation7 + $0x80] sm:$0xff]  }
 0xd1b   :  { %3181 = vmatprep.mubr.msk.bf16.mxu1 %vm3587_vm0, %v3586_v0  ;;  %3178 = vmatpush3.bf16.msra.mxu1 %v3389_v44 }
 0xd1c   :  { %3179 = vmatprep.subr.bf16.mxu1 %v3586_v0 }
 0xd1f   :  { %3180 = vmatpush3.bf16.msra.mxu1 %v3391_v56 }
 0xd20   :  { %3193 = vmatprep.subr.bf16.mxu1 %v3586_v0 }
 0xdda   :  { %v1416_v37 = vpop.f32.mrf.mxu1 }
 0xddb   :  { %v1417_v43 = vadd.f32 %v1416_v37, %v1366_v35 }
 0xddc   :  { %v3167_v38 = vpop.f32.mrf.mxu1 }
 0xddd   :  { %v1423_v48 = vmax.f32 %v1417_v43, 0.0 }
 0xdde   :  { %v1419_v45 = vpop.f32.mrf.mxu1 }
 0xddf   :  { %v1420_v46 = vadd.f32 %v1419_v45, %v1366_v35  ;;  %v3469_v35 = vld [vmem:[#allocation8] sm:$0xff] }
 0xde0   :  { %v3168_v47 = vpop.f32.mrf.mxu1  ;;  %v1553_v37 = vrot.slane %v3469_v35, %v1552_v32 }
 0xde1   :  { %v1424_v50 = vmax.f32 %v1420_v46, 0.0 }
 0xde3   :  { %v1430_v52 = vpack.c.bf16 %v1424_v50, %v1423_v48 }
 0xde5   :  { %3174 = vmatmul.mubr.msk.bf16.vlgmr.msra.gmra.mxu0 %vm182_vm2, %v1430_v52 }
 0xde6   :  { %3189 = vmatprep.mubr.msk.bf16.mxu0 %vm3587_vm0, %v3586_v0  ;;  %3186 = vmatpush3.bf16.msra.mxu0 %v3390_v7 }
 0xde7   :  { %3187 = vmatprep.subr.bf16.mxu0 %v3586_v0 }
 0xdea   :  { %3188 = vmatpush3.bf16.msra.mxu0 %v3392_v8 }
 0xdeb   :  { %3201 = vmatprep.subr.bf16.mxu0 %v3586_v0 }
 0xea5   :  { %v1484_v39 = vpop.f32.mrf.mxu0 }
 0xea6   :  { %v1485_v55 = vadd.f32 %v1484_v39, %v1434_v42 }
 0xea7   :  { %v3175_v58 = vpop.f32.mrf.mxu0 }
 0xea8   :  { %v1491_v59 = vadd.f32 %v1485_v55, %v1355_v27  ;;  %v3393_v27 = vld [vmem:[#allocation7 + $0x88] sm:$0xff]  }
 0xea9   :  { %v1487_v60 = vpop.f32.mrf.mxu0 }
 0xeaa   :  { %v1488_v61 = vadd.f32 %v1487_v60, %v1434_v42  ;;  %v1493_v62 = vsel %vm182_vm2, %v1491_v59, 0.0 }
 0xeab   :  { %1494 = vadd.xlane.f32.xlu1 %v1493_v62  ;;  %v3176_v63 = vpop.f32.mrf.mxu0 }
 0xeac   :  { %v1492_v1 = vadd.f32 %v1488_v61, %v1356_v28 }
 0xeae   :  { %v1496_v2 = vsel %vm182_vm2, %v1492_v1, 0.0 }
 0xeaf   :  { %1497 = vadd.xlane.f32.xlu0 %v1496_v2 }
 0xebc   :  { %1518 = vperm.xlu1 %3358, %v3901_v4  }
 0xec0   :  { %3359 = vset.pattern.permute.xlu1 %v3596_v3 }
 0xf34   :  { %v1495_v12 = vpop.xlane.xlu1 %1494 }
 0xf38   :  { %v1498_v57 = vpop.xlane.xlu0 %1497  ;;  %v1519_v9 = vpop.permute.xlu1 %1518 }
 0xf39   :  { %v1499_v36 = vadd.f32 %v1498_v57, %v1495_v12 }
 0xf3b   :  { %v1500_v17 = vmul.f32 0.015625, %v1499_v36 }
 0xf3d   :  { %v1501_v40 = vsub.f32 %v1491_v59, %v1500_v17  ;;  %v1502_v41 = vsub.f32 %v1492_v1, %v1500_v17 }
 0xf3f   :  { %v1503_v5 = vmul.f32 %v1501_v40, %v1501_v40  ;;  %v1504_v18 = vmul.f32 %v1502_v41, %v1502_v41 }
 0xf41   :  { %v1505_v6 = vsel %vm182_vm2, %v1503_v5, 0.0  ;;  %v1508_v34 = vsel %vm182_vm2, %v1504_v18, 0.0 }
 0xf42   :  { %1506 = vadd.xlane.f32.xlu1 %v1505_v6 }
 0xf46   :  { %1509 = vadd.xlane.f32.xlu1 %v1508_v34 }
 0xf57   :  { %1524 = vperm.xlu1 %3359, %v3901_v4  }
 0xfcb   :  { %v1507_v13 = vpop.xlane.xlu1 %1506 }
 0xfcf   :  { %v1510_v14 = vpop.xlane.xlu1 %1509 }
 0xfd0   :  { %v1511_v51 = vadd.f32 %v1510_v14, %v1507_v13 }
 0xfd2   :  { %v1512_v15 = vmul.f32 0.015625, %v1511_v51 }
 0xfd3   :  { %v1525_v21 = vpop.permute.xlu1 %1524 }
 0xfd4   :  { %v1513_v4 = vadd.f32 1e-05, %v1512_v15 }
 0xfd6   :  { %3435 = vrsqrt.f32 %v1513_v4 }
 0xfe3   :  { %v3436_v16 = vpop.eup %3435 }
 0xfe4   :  { %v1515_v19 = vmul.f32 %v3436_v16, %v1501_v40  ;;  %v1516_v20 = vmul.f32 %v3436_v16, %v1502_v41 }
 0xfe6   :  { %v1521_v22 = vmul.f32 %v1519_v9, %v1515_v19  ;;  %v1522_v49 = vmul.f32 %v1519_v9, %v1516_v20 }
 0xfe8   :  { %v1527_v25 = vadd.f32 %v1525_v21, %v1521_v22  ;;  %v1528_v26 = vadd.f32 %v1525_v21, %v1522_v49 }
 0xfea   :  { %v1549_v28 = vpack.c.bf16 %v1528_v26, %v1527_v25 }
 0xfec   :  { %3182 = vmatmul.mubr.msk.bf16.vlgmr.msra.gmra.mxu1 %vm182_vm2, %v1549_v28  ;;  %3190 = vmatmul.mubr.msk.bf16.vlgmr.msra.gmra.mxu0 %vm182_vm2, %v1549_v28 }
 0xfed   :  { %3194 = vmatpush3.bf16.msra.mxu1 %v3393_v27  ;;  %3197 = vmatprep.mubr.msk.bf16.mxu1 %vm3587_vm0, %v3586_v0 }
 0xfee   :  { %3195 = vmatprep.subr.bf16.mxu1 %v3586_v0  ;;  %3203 = vmatprep.mubr.msk.bf16.mxu0 %vm3587_vm0, %v3586_v0 }
 0xff1   :  { %3196 = vmatpush3.bf16.msra.mxu1 %v3394_v29 }
 0xff2   :  { %3207 = vmatprep.subr.bf16.mxu1 %v3586_v0 }
 0xff4   :  { %3198 = vmatmul.mubr.msk.bf16.vlgmr.msra.gmra.mxu1 %vm182_vm2, %v1549_v28 }
 0xff5   :  { %3209 = vmatprep.mubr.msk.bf16.mxu1 %vm3587_vm0, %v3586_v0 }
0x10ac   :  { %v1603_v38 = vpop.f32.mrf.mxu1  ;;  %v1664_v43 = vpop.f32.mrf.mxu0 }
0x10ad   :  { %v1665_v45 = vadd.f32 %v1664_v43, %v1617_v33  ;;  %v1604_v48 = vadd.f32 %v1603_v38, %v1553_v37 }
0x10ae   :  { %v3183_v46 = vpop.f32.mrf.mxu1  ;;  %v3191_v47 = vpop.f32.mrf.mxu0 }
0x10af   :  { %v3948_v50 = vpack.c.bf16 %v1665_v45, %v1665_v45  ;;  %v1610_v58 = vmul.f32 0.35355338, %v1604_v48 }
0x10b0   :  { %v1606_v52 = vpop.f32.mrf.mxu1  ;;  %v1667_v53 = vpop.f32.mrf.mxu0 }
0x10b1   :  { %v1668_v54 = vadd.f32 %v1667_v53, %v1617_v33  ;;  %v1736_v42 = vsel %vm349_vm3, %v3948_v50, 0  ;;  %v1607_v59 = vadd.f32 %v1606_v52, %v1553_v37  ;;  %v3960_v2 = vpack.c.bf16 %v1610_v58, %v1610_v58 }
0x10b2   :  { %v3184_v39 = vpop.f32.mrf.mxu1  ;;  %v3192_v55 = vpop.f32.mrf.mxu0  ;;  %3202 = vmatpush3.bf16.xpose.msra.mxu0 %v1736_v42 }
0x10b3   :  { %v3955_v60 = vpack.c.bf16 %v1668_v54, %v1668_v54  ;;  %3213 = vmatprep.subr.bf16.mxu0 %v3586_v0  ;;  %v1611_v3 = vmul.f32 0.35355338, %v1607_v59 }
0x10b4   :  { %v1723_v61 = vpop.f32.mrf.mxu1 }
0x10b5   :  { %v1724_v62 = vadd.f32 %v1723_v61, %v1676_v11  ;;  %v1782_v63 = vsel %vm349_vm3, %v3955_v60, 0  ;;  %v3971_v40 = vpack.c.bf16 %v1611_v3, %v1611_v3 }
0x10b6   :  { %v3199_v1 = vpop.f32.mrf.mxu1  ;;  %3208 = vmatpush3.bf16.xpose.msra.mxu1 %v1782_v63 }
0x10b7   :  { %v3962_v24 = vpack.c.bf16 %v1724_v62, %v1724_v62  ;;  %3219 = vmatprep.subr.bf16.mxu1 %v3586_v0 }
0x10b8   :  { %v1726_v12 = vpop.f32.mrf.mxu1 }
0x10b9   :  { %v1727_v57 = vadd.f32 %v1726_v12, %v1676_v11  ;;  %3204 = vmatmul.mubr.msk.bf16.vlgmr.msra.gmra.mxu0 %vm349_vm3, %v3960_v2  ;;  %v1852_v36 = vsel %vm469_vm4, %v3962_v24, 0 }
0x10ba   :  { %v3200_v17 = vpop.f32.mrf.mxu1  ;;  %3214 = vmatpush3.bf16.msra.mxu0 %v1852_v36  ;;  %3215 = vmatprep.mubr.msk.bf16.mxu0 %vm3587_vm0, %v3586_v0 }
0x10bb   :  { %v3973_v41 = vpack.c.bf16 %v1727_v57, %v1727_v57  ;;  %3225 = vmatprep.subr.bf16.mxu0 %v3586_v0 }
0x10bd   :  { %3210 = vmatmul.mubr.msk.bf16.vlgmr.msra.gmra.mxu1 %vm349_vm3, %v3971_v40  ;;  %v1898_v5 = vsel %vm469_vm4, %v3973_v41, 0 }
0x10be   :  { %3220 = vmatpush3.bf16.msra.mxu1 %v1898_v5  ;;  %3221 = vmatprep.mubr.msk.bf16.mxu1 %vm3587_vm0, %v3586_v0 }
0x10bf   :  { %3231 = vmatprep.subr.bf16.mxu1 %v3586_v0 }
0x1179   :  { %v1772_v6 = vpop.f32.mrf.mxu0 }
0x117a   :  { %v1824_v18 = vsel %vm349_vm3, %v1772_v6, -inf }
0x117b   :  { %1825 = vmax.xlane.f32.xlu0 %v1824_v18  ;;  %v3205_v34 = vpop.f32.mrf.mxu0 }
0x117d   :  { %v1775_v44 = vpop.f32.mrf.mxu0  ;;  %v1818_v7 = vpop.f32.mrf.mxu1 }
0x117e   :  { %v1827_v56 = vsel %vm349_vm3, %v1818_v7, -inf }
0x117f   :  { %1828 = vmax.xlane.f32.xlu1 %v1827_v56  ;;  %v3206_v8 = vpop.f32.mrf.mxu0  ;;  %v3211_v9 = vpop.f32.mrf.mxu1 }
0x1181   :  { %v1821_v13 = vpop.f32.mrf.mxu1 }
0x1183   :  { %v3212_v14 = vpop.f32.mrf.mxu1 }
0x1190   :  { %1993 = vrot.lane.b32.xlu1 %v3971_v40, %s3588_s2 }
0x1191   :  { %1944 = vrot.lane.b32.xlu0 %v3948_v50, %s3588_s2 }
0x1204   :  { %v1826_v51 = vpop.xlane.xlu0 %1825 }
0x1205   :  { %v1830_v15 = vsub.f32 %v1772_v6, %v1826_v51 }
0x1207   :  { %v1832_v4 = vmul.f32 1.442695, %v1830_v15 }
0x1208   :  { %v1829_v16 = vpop.xlane.xlu1 %1828  ;;  %v1945_v26 = vpop.permute.xlu0 %1944 }
0x1209   :  { %3437 = vpow2.f32 %v1832_v4  ;;  %v1831_v19 = vsub.f32 %v1818_v7, %v1829_v16  ;;  %v1950_v37 = vsel %vm349_vm3, %v1945_v26, 0 }
0x120b   :  { %v1834_v20 = vmul.f32 1.442695, %v1831_v19 }
0x120c   :  { %v1994_v48 = vpop.permute.xlu1 %1993 }
0x120d   :  { %3439 = vpow2.f32 %v1834_v20 }
0x1216   :  { %v3438_v21 = vpop.eup %3437 }
0x1217   :  { %v1836_v22 = vsel %vm349_vm3, %v3438_v21, 0.0 }
0x1218   :  { %1837 = vadd.xlane.f32.xlu0 %v1836_v22 }
0x121a   :  { %v3440_v49 = vpop.eup %3439 }
0x121b   :  { %v1839_v25 = vsel %vm349_vm3, %v3440_v49, 0.0 }
0x121c   :  { %1840 = vadd.xlane.f32.xlu0 %v1839_v25 }
0x1232   :  { %1996 = vrot.lane.b32.xlu0 %v3955_v60, %s3588_s2 }
0x1236   :  { %1941 = vrot.lane.b32.xlu0 %v3960_v2, %s3588_s2 }
0x12a1   :  { %v1838_v27 = vpop.xlane.xlu0 %1837 }
0x12a2   :  { %3441 = vrcp.f32 %v1838_v27 }
0x12a5   :  { %v1841_v28 = vpop.xlane.xlu0 %1840 }
0x12a6   :  { %3443 = vrcp.f32 %v1841_v28 }
0x12a9   :  { %v1997_v43 = vpop.permute.xlu0 %1996 }
0x12aa   :  { %v2002_v46 = vsel %vm349_vm3, %v1997_v43, 0 }
0x12ad   :  { %v1942_v47 = vpop.permute.xlu0 %1941 }
0x12af   :  { %v3442_v29 = vpop.eup %3441 }
0x12b0   :  { %v1844_v32 = vmul.f32 %v3442_v29, %v3438_v21 }
0x12b2   :  { %v1846_v33 = vpack.c.bf16 %v1844_v32, %v1844_v32 }
0x12b3   :  { %v3444_v35 = vpop.eup %3443 }
0x12b4   :  { %3216 = vmatmul.mubr.msk.bf16.vlgmr.msra.gmra.mxu0 %vm349_vm3, %v1846_v33  ;;  %v1845_v38 = vmul.f32 %v3444_v35, %v3440_v49 }
0x12b5   :  { %3226 = vmatpush3.bf16.xpose.msra.mxu0 %v1950_v37  ;;  %3227 = vmatprep.mubr.msk.bf16.mxu0 %vm3587_vm0, %v3586_v0 }
0x12b6   :  { %v1847_v45 = vpack.c.bf16 %v1845_v38, %v1845_v38  ;;  %3237 = vmatprep.subr.bf16.mxu0 %v3586_v0 }
0x12b8   :  { %3222 = vmatmul.mubr.msk.bf16.vlgmr.msra.gmra.mxu1 %vm349_vm3, %v1847_v45 }
0x12b9   :  { %3232 = vmatpush3.bf16.xpose.msra.mxu1 %v2002_v46  ;;  %3233 = vmatprep.mubr.msk.bf16.mxu1 %vm3587_vm0, %v3586_v0 }
0x12ba   :  { %3243 = vmatprep.subr.bf16.mxu1 %v3586_v0 }
0x12bc   :  { %3228 = vmatmul.mubr.msk.bf16.vlgmr.msra.gmra.mxu0 %vm349_vm3, %v1942_v47 }
0x12bd   :  { %3239 = vmatprep.mubr.msk.bf16.mxu0 %vm3587_vm0, %v3586_v0 }
0x12c0   :  { %3234 = vmatmul.mubr.msk.bf16.vlgmr.msra.gmra.mxu1 %vm349_vm3, %v1994_v48 }
0x12c1   :  { %3245 = vmatprep.mubr.msk.bf16.mxu1 %vm3587_vm0, %v3586_v0 }
0x1374   :  { %v4011_v52 = vpop.f32.mrf.mxu0 }
0x1376   :  { %v3217_v53 = vpop.f32.mrf.mxu0 }
0x1378   :  { %v1891_v54 = vpop.f32.mrf.mxu0  ;;  %v4013_v42 = vpop.f32.mrf.mxu1 }
0x137a   :  { %v3218_v11 = vpop.f32.mrf.mxu0  ;;  %v3223_v39 = vpop.f32.mrf.mxu1 }
0x137c   :  { %v1937_v55 = vpop.f32.mrf.mxu1  ;;  %v1986_v58 = vpop.f32.mrf.mxu0 }
0x137d   :  { %v2044_v59 = vsel %vm349_vm3, %v1986_v58, -inf }
0x137e   :  { %v3224_v61 = vpop.f32.mrf.mxu1  ;;  %2045 = vmax.xlane.f32.xlu0 %v2044_v59  ;;  %v3229_v62 = vpop.f32.mrf.mxu0 }
0x1380   :  { %v1989_v63 = vpop.f32.mrf.mxu0  ;;  %v2038_v1 = vpop.f32.mrf.mxu1 }
0x1381   :  { %v2047_v3 = vsel %vm349_vm3, %v2038_v1, -inf }
0x1382   :  { %2048 = vmax.xlane.f32.xlu1 %v2047_v3  ;;  %v3230_v12 = vpop.f32.mrf.mxu0  ;;  %v3235_v57 = vpop.f32.mrf.mxu1 }
0x1384   :  { %v2041_v36 = vpop.f32.mrf.mxu1 }
0x1386   :  { %v3236_v17 = vpop.f32.mrf.mxu1 }
0x1393   :  { %2118 = vrot.lane.b32.xlu1 %v3973_v41, %s3588_s2 }
0x1394   :  { %2069 = vrot.lane.b32.xlu0 %v3962_v24, %s3588_s2 }
0x1397   :  { %2166 = vrot.lane.b32.xlu1 %v3960_v2, %s3589_s4 }
0x1398   :  { %2168 = vrot.lane.b32.xlu0 %v3948_v50, %s3589_s4 }
0x1407   :  { %v2046_v5 = vpop.xlane.xlu0 %2045 }
0x1408   :  { %v2050_v6 = vsub.f32 %v1986_v58, %v2046_v5 }
0x140a   :  { %v2052_v18 = vmul.f32 1.442695, %v2050_v6 }
0x140b   :  { %v2049_v34 = vpop.xlane.xlu1 %2048  ;;  %v2070_v44 = vpop.permute.xlu0 %2069 }
0x140c   :  { %3445 = vpow2.f32 %v2052_v18  ;;  %v2051_v7 = vsub.f32 %v2038_v1, %v2049_v34  ;;  %v2075_v56 = vsel %vm469_vm4, %v2070_v44, 0 }
0x140d   :  { %3238 = vmatpush3.bf16.msra.mxu0 %v2075_v56 }
0x140e   :  { %v2054_v8 = vmul.f32 1.442695, %v2051_v7  ;;  %3249 = vmatprep.subr.bf16.mxu0 %v3586_v0 }
0x140f   :  { %v2119_v9 = vpop.permute.xlu1 %2118  ;;  %v2169_v16 = vpop.permute.xlu0 %2168 }
0x1410   :  { %3447 = vpow2.f32 %v2054_v8  ;;  %v2124_v13 = vsel %vm469_vm4, %v2119_v9, 0  ;;  %v2174_v26 = vsel %vm349_vm3, %v2169_v16, 0 }
0x1411   :  { %3244 = vmatpush3.bf16.msra.mxu1 %v2124_v13 }
0x1412   :  { %3255 = vmatprep.subr.bf16.mxu1 %v3586_v0 }
0x1413   :  { %v2167_v33 = vpop.permute.xlu1 %2166 }
0x1419   :  { %v3446_v14 = vpop.eup %3445 }
0x141a   :  { %v2056_v51 = vsel %vm349_vm3, %v3446_v14, 0.0 }
0x141b   :  { %2057 = vadd.xlane.f32.xlu0 %v2056_v51 }
0x141d   :  { %v3448_v15 = vpop.eup %3447 }
0x141e   :  { %v2059_v4 = vsel %vm349_vm3, %v3448_v15, 0.0 }
0x141f   :  { %2060 = vadd.xlane.f32.xlu0 %v2059_v4 }
0x1435   :  { %2218 = vrot.lane.b32.xlu0 %v3955_v60, %s3589_s4 }
0x1439   :  { %2216 = vrot.lane.b32.xlu0 %v3971_v40, %s3589_s4 }
0x14a4   :  { %v2058_v19 = vpop.xlane.xlu0 %2057 }
0x14a5   :  { %3449 = vrcp.f32 %v2058_v19 }
0x14a8   :  { %v2061_v20 = vpop.xlane.xlu0 %2060 }
0x14a9   :  { %3451 = vrcp.f32 %v2061_v20 }
0x14ac   :  { %v2219_v28 = vpop.permute.xlu0 %2218 }
0x14ad   :  { %v2224_v32 = vsel %vm349_vm3, %v2219_v28, 0 }
0x14b0   :  { %v2217_v35 = vpop.permute.xlu0 %2216 }
0x14b2   :  { %v3450_v21 = vpop.eup %3449 }
0x14b3   :  { %v2064_v22 = vmul.f32 %v3450_v21, %v3446_v14 }
0x14b5   :  { %v2066_v49 = vpack.c.bf16 %v2064_v22, %v2064_v22 }
0x14b6   :  { %v3452_v25 = vpop.eup %3451 }
0x14b7   :  { %3240 = vmatmul.mubr.msk.bf16.vlgmr.msra.gmra.mxu0 %vm349_vm3, %v2066_v49  ;;  %v2065_v27 = vmul.f32 %v3452_v25, %v3448_v15 }
0x14b8   :  { %3250 = vmatpush3.bf16.xpose.msra.mxu0 %v2174_v26  ;;  %3251 = vmatprep.mubr.msk.bf16.mxu0 %vm3587_vm0, %v3586_v0 }
0x14b9   :  { %v2067_v29 = vpack.c.bf16 %v2065_v27, %v2065_v27  ;;  %3261 = vmatprep.subr.bf16.mxu0 %v3586_v0 }
0x14bb   :  { %3246 = vmatmul.mubr.msk.bf16.vlgmr.msra.gmra.mxu1 %vm349_vm3, %v2067_v29 }
0x14bc   :  { %3256 = vmatpush3.bf16.xpose.msra.mxu1 %v2224_v32  ;;  %3257 = vmatprep.mubr.msk.bf16.mxu1 %vm3587_vm0, %v3586_v0 }
0x14bd   :  { %3267 = vmatprep.subr.bf16.mxu1 %v3586_v0 }
0x14bf   :  { %3252 = vmatmul.mubr.msk.bf16.vlgmr.msra.gmra.mxu0 %vm349_vm3, %v2167_v33 }
0x14c0   :  { %3263 = vmatprep.mubr.msk.bf16.mxu0 %vm3587_vm0, %v3586_v0 }
0x14c3   :  { %3258 = vmatmul.mubr.msk.bf16.vlgmr.msra.gmra.mxu1 %vm349_vm3, %v2217_v35 }
0x14c4   :  { %3269 = vmatprep.mubr.msk.bf16.mxu1 %vm3587_vm0, %v3586_v0 }
0x1577   :  { %v4051_v37 = vpop.f32.mrf.mxu0 }
0x1579   :  { %v3241_v38 = vpop.f32.mrf.mxu0 }
0x157b   :  { %v2114_v43 = vpop.f32.mrf.mxu0  ;;  %v4053_v45 = vpop.f32.mrf.mxu1 }
0x157c   :  { %v3360_v46 = vpack.i.bf16 %v4053_v45, %v4051_v37 }
0x157d   :  { %v3242_v47 = vpop.f32.mrf.mxu0  ;;  %v3247_v48 = vpop.f32.mrf.mxu1 }
0x157f   :  { %v2163_v53 = vpop.f32.mrf.mxu1  ;;  %v2210_v54 = vpop.f32.mrf.mxu0 }
0x1580   :  { %v2266_v11 = vsel %vm349_vm3, %v2210_v54, -inf }
0x1581   :  { %v3248_v39 = vpop.f32.mrf.mxu1  ;;  %2267 = vmax.xlane.f32.xlu1 %v2266_v11  ;;  %v3253_v55 = vpop.f32.mrf.mxu0 }
0x1583   :  { %v2213_v58 = vpop.f32.mrf.mxu0  ;;  %v2260_v59 = vpop.f32.mrf.mxu1 }
0x1584   :  { %v2269_v61 = vsel %vm349_vm3, %v2260_v59, -inf }
0x1585   :  { %2270 = vmax.xlane.f32.xlu0 %v2269_v61  ;;  %v3254_v62 = vpop.f32.mrf.mxu0  ;;  %v3259_v63 = vpop.f32.mrf.mxu1 }
0x1587   :  { %v2263_v1 = vpop.f32.mrf.mxu1 }
0x1589   :  { %v3260_v3 = vpop.f32.mrf.mxu1 }
0x1592   :  { %2338 = vrot.lane.b32.xlu1 %v3973_v41, %s3589_s4 }
0x159b   :  { %2290 = vrot.lane.b32.xlu0 %v3962_v24, %s3589_s4 }
0x160a   :  { %v2268_v12 = vpop.xlane.xlu1 %2267 }
0x160b   :  { %v2272_v57 = vsub.f32 %v2210_v54, %v2268_v12 }
0x160d   :  { %v2274_v36 = vmul.f32 1.442695, %v2272_v57 }
0x160e   :  { %v2271_v17 = vpop.xlane.xlu0 %2270  ;;  %v2339_v5 = vpop.permute.xlu1 %2338 }
0x160f   :  { %3453 = vpow2.f32 %v2274_v36  ;;  %v2273_v6 = vsub.f32 %v2260_v59, %v2271_v17  ;;  %v2344_v18 = vsel %vm469_vm4, %v2339_v5, 0 }
0x1610   :  { %3268 = vmatpush3.bf16.msra.mxu1 %v2344_v18 }
0x1611   :  { %v2276_v34 = vmul.f32 1.442695, %v2273_v6  ;;  %3279 = vmatprep.subr.bf16.mxu1 %v3586_v0 }
0x1612   :  { %v2291_v44 = vpop.permute.xlu0 %2290 }
0x1613   :  { %3455 = vpow2.f32 %v2276_v34  ;;  %v2296_v7 = vsel %vm469_vm4, %v2291_v44, 0 }
0x1614   :  { %3262 = vmatpush3.bf16.msra.mxu0 %v2296_v7 }
0x1615   :  { %3273 = vmatprep.subr.bf16.mxu0 %v3586_v0 }
0x161c   :  { %v3454_v56 = vpop.eup %3453 }
0x161d   :  { %v2278_v8 = vsel %vm349_vm3, %v3454_v56, 0.0 }
0x161e   :  { %2279 = vadd.xlane.f32.xlu0 %v2278_v8 }
0x1620   :  { %v3456_v9 = vpop.eup %3455 }
0x1621   :  { %v2281_v13 = vsel %vm349_vm3, %v3456_v9, 0.0 }
0x1622   :  { %2282 = vadd.xlane.f32.xlu1 %v2281_v13  ;;  %v3396_v13 = vld [vmem:[#allocation7 + $0x90] sm:$0xff]  }
0x1633   :  { %2388 = vrot.lane.b32.xlu1 %v3948_v50, %s3590_s23 }
0x1634   :  { %2438 = vrot.lane.b32.xlu0 %v3955_v60, %s3590_s23 }
0x1637   :  { %2386 = vrot.lane.b32.xlu1 %v3960_v2, %s3590_s23 }
0x1638   :  { %2436 = vrot.lane.b32.xlu0 %v3971_v40, %s3590_s23 }
0x16a7   :  { %v2280_v14 = vpop.xlane.xlu0 %2279 }
0x16a8   :  { %3457 = vrcp.f32 %v2280_v14 }
0x16ab   :  { %v2283_v51 = vpop.xlane.xlu1 %2282  ;;  %v2439_v21 = vpop.permute.xlu0 %2438 }
0x16ac   :  { %3459 = vrcp.f32 %v2283_v51  ;;  %v2444_v40 = vsel %vm349_vm3, %v2439_v21, 0 }
0x16af   :  { %v2389_v16 = vpop.permute.xlu1 %2388  ;;  %v2437_v49 = vpop.permute.xlu0 %2436 }
0x16b0   :  { %v2394_v50 = vsel %vm349_vm3, %v2389_v16, 0 }
0x16b3   :  { %v2387_v22 = vpop.permute.xlu1 %2386 }
0x16b5   :  { %v3458_v15 = vpop.eup %3457 }
0x16b6   :  { %v2286_v4 = vmul.f32 %v3458_v15, %v3454_v56 }
0x16b8   :  { %v2288_v19 = vpack.c.bf16 %v2286_v4, %v2286_v4 }
0x16b9   :  { %v3460_v20 = vpop.eup %3459 }
0x16ba   :  { %3264 = vmatmul.mubr.msk.bf16.vlgmr.msra.gmra.mxu0 %vm349_vm3, %v2288_v19  ;;  %v2287_v60 = vmul.f32 %v3460_v20, %v3456_v9  ;;  %v3395_v9 = vld [vmem:[#allocation7 + $0x98] sm:$0xff]  }
0x16bb   :  { %3274 = vmatpush3.bf16.xpose.msra.mxu0 %v2394_v50  ;;  %3275 = vmatprep.mubr.msk.bf16.mxu0 %vm3587_vm0, %v3586_v0 }
0x16bc   :  { %v2289_v2 = vpack.c.bf16 %v2287_v60, %v2287_v60  ;;  %3285 = vmatprep.subr.bf16.mxu0 %v3586_v0 }
0x16be   :  { %3270 = vmatmul.mubr.msk.bf16.vlgmr.msra.gmra.mxu1 %vm349_vm3, %v2289_v2 }
0x16bf   :  { %3280 = vmatpush3.bf16.xpose.msra.mxu1 %v2444_v40  ;;  %3281 = vmatprep.mubr.msk.bf16.mxu1 %vm3587_vm0, %v3586_v0 }
0x16c0   :  { %3291 = vmatprep.subr.bf16.mxu1 %v3586_v0 }
0x16c2   :  { %3276 = vmatmul.mubr.msk.bf16.vlgmr.msra.gmra.mxu0 %vm349_vm3, %v2387_v22 }
0x16c3   :  { %3287 = vmatprep.mubr.msk.bf16.mxu0 %vm3587_vm0, %v3586_v0 }
0x16c6   :  { %3282 = vmatmul.mubr.msk.bf16.vlgmr.msra.gmra.mxu1 %vm349_vm3, %v2437_v49 }
0x16c7   :  { %3293 = vmatprep.mubr.msk.bf16.mxu1 %vm3587_vm0, %v3586_v0 }
0x177a   :  { %v2332_v25 = vpop.f32.mrf.mxu0 }
0x177c   :  { %v3265_v26 = vpop.f32.mrf.mxu0 }
0x177e   :  { %v2335_v27 = vpop.f32.mrf.mxu0  ;;  %v2380_v28 = vpop.f32.mrf.mxu1 }
0x177f   :  { %v3365_v29 = vpack.i.bf16 %v2380_v28, %v2332_v25 }
0x1780   :  { %v3266_v32 = vpop.f32.mrf.mxu0  ;;  %v3271_v33 = vpop.f32.mrf.mxu1 }
0x1782   :  { %v2383_v35 = vpop.f32.mrf.mxu1  ;;  %v2430_v38 = vpop.f32.mrf.mxu0 }
0x1783   :  { %v2486_v43 = vsel %vm349_vm3, %v2430_v38, -inf }
0x1784   :  { %v3272_v47 = vpop.f32.mrf.mxu1  ;;  %2487 = vmax.xlane.f32.xlu1 %v2486_v43  ;;  %v3277_v48 = vpop.f32.mrf.mxu0 }
0x1786   :  { %v2433_v53 = vpop.f32.mrf.mxu0  ;;  %v2480_v54 = vpop.f32.mrf.mxu1 }
0x1787   :  { %v2489_v11 = vsel %vm349_vm3, %v2480_v54, -inf  ;;  %v2640_v53 = vrot.slane %v3942_v31, %v233_v23  ;;  %v2706_v23 = vrot.slane %v3942_v31, %v292_v30 }
0x1788   :  { %2490 = vmax.xlane.f32.xlu0 %v2489_v11  ;;  %v3278_v39 = vpop.f32.mrf.mxu0  ;;  %v3283_v55 = vpop.f32.mrf.mxu1 }
0x178a   :  { %v2483_v58 = vpop.f32.mrf.mxu1 }
0x178c   :  { %v3284_v59 = vpop.f32.mrf.mxu1 }
0x180d   :  { %v2488_v61 = vpop.xlane.xlu1 %2487 }
0x180e   :  { %v2492_v62 = vsub.f32 %v2430_v38, %v2488_v61  ;;  %v3399_v61 = vld [vmem:[%s4158_s3 + $0x8] sm:$0xff]  }
0x1810   :  { %v2494_v63 = vmul.f32 1.442695, %v2492_v62  ;;  %v3400_v62 = vld [vmem:[%s4158_s3] sm:$0xff]   ;;  %s3597_s3 = smov [#allocation10]  }
0x1811   :  { %v2491_v1 = vpop.xlane.xlu0 %2490  ;;  %s2840_s10 = sshll.u32 %s3597_s3, 4  ;;  %s2841_s10 = int_to_ptr.vmem [resolvable:$true] %s2840_s10 }
0x1812   :  { %3461 = vpow2.f32 %v2494_v63  ;;  %v2493_v3 = vsub.f32 %v2480_v54, %v2491_v1  ;;  %s3550_s13 = scalar_lea.vmem %s2841_s10, 256  ;;  %p3555_p7 = scmp.lt.s32.totalorder %s2841_s10, %s2841_s10 }
0x1813   :  { %p3551_p6 = scmp.ne.s32.totalorder %s2841_s10, %s3550_s13  ;;  %p3556_p8 = scmp.lt.s32.totalorder %s3550_s13, %s3550_s13 }
0x1814   :  { %v2496_v12 = vmul.f32 1.442695, %v2493_v3 }
0x1815   :  { %p3557_p9 = por %p3556_p8, %p3555_p7 }
0x1816   :  { %3463 = vpow2.f32 %v2496_v12 }
0x1817   :  { %p3558_p10 = pnand %p3557_p9, %p3551_p6 }
0x181f   :  { %v3462_v57 = vpop.eup %3461 }
0x1820   :  { %v2498_v36 = vsel %vm349_vm3, %v3462_v57, 0.0 }
0x1821   :  { %2499 = vadd.xlane.f32.xlu0 %v2498_v36 }
0x1823   :  { %v3464_v17 = vpop.eup %3463 }
0x1824   :  { %v2501_v5 = vsel %vm349_vm3, %v3464_v17, 0.0 }
0x1825   :  { %2502 = vadd.xlane.f32.xlu1 %v2501_v5 }
0x1836   :  { %2558 = vrot.lane.b32.xlu1 %v3973_v41, %s3590_s23 }
0x1837   :  { %2510 = vrot.lane.b32.xlu0 %v3962_v24, %s3590_s23 }
0x183a   :  { %3361 = vrot.lane.b32.xlu1 %v3360_v46, %s3583_s12 }
0x183b   :  { %3366 = vrot.lane.b32.xlu0 %v3365_v29, %s3591_s24 }
0x18aa   :  { %v2500_v6 = vpop.xlane.xlu0 %2499 }
0x18ab   :  { %3465 = vrcp.f32 %v2500_v6 }
0x18ae   :  { %v2511_v18 = vpop.permute.xlu0 %2510  ;;  %v2503_v34 = vpop.xlane.xlu1 %2502 }
0x18af   :  { %v2516_v44 = vsel %vm469_vm4, %v2511_v18, 0  ;;  %3467 = vrcp.f32 %v2503_v34 }
0x18b0   :  { %3286 = vmatpush3.bf16.msra.mxu0 %v2516_v44 }
0x18b1   :  { %3297 = vmatprep.subr.bf16.mxu0 %v3586_v0 }
0x18b2   :  { %v2559_v41 = vpop.permute.xlu1 %2558  ;;  %v3367_v22 = vpop.permute.xlu0 %3366 }
0x18b3   :  { %v2564_v24 = vsel %vm469_vm4, %v2559_v41, 0  ;;  %v3369_v26 = vunpack.i.h.bf16 %v3367_v22  ;;  %v3368_v27 = vunpack.i.l.bf16 %v3367_v22 }
0x18b4   :  { %3292 = vmatpush3.bf16.msra.mxu1 %v2564_v24 }
0x18b5   :  { %3305 = vmatprep.subr.bf16.mxu1 %v3586_v0 }
0x18b6   :  { %v3362_v21 = vpop.permute.xlu1 %3361 }
0x18b7   :  { %v3364_v2 = vunpack.i.h.bf16 %v3362_v21  ;;  %v3363_v40 = vunpack.i.l.bf16 %v3362_v21 }
0x18b8   :  { %v3466_v37 = vpop.eup %3465 }
0x18b9   :  { %v2506_v45 = vmul.f32 %v3466_v37, %v3462_v57  ;;  %v2631_v49 = vsel %vm349_vm3, %v4013_v42, %v3364_v2  ;;  %v2630_v25 = vsel %vm349_vm3, %v4011_v52, %v3363_v40  ;;  %v3397_v52 = vld [vmem:[#allocation7 + $0xa8] sm:$0xff]   ;;  %v3398_v42 = vld [vmem:[#allocation7 + $0xa0] sm:$0xff]  }
0x18ba   :  { %v2632_v33 = vsel %vm101_vm1, %v2630_v25, %v3368_v27  ;;  %v2633_v35 = vsel %vm101_vm1, %v2631_v49, %v3369_v26 }
0x18bb   :  { %v2508_v46 = vpack.c.bf16 %v2506_v45, %v2506_v45 }
0x18bc   :  { %v3468_v7 = vpop.eup %3467 }
0x18bd   :  { %3288 = vmatmul.mubr.msk.bf16.vlgmr.msra.gmra.mxu0 %vm349_vm3, %v2508_v46  ;;  %v2507_v56 = vmul.f32 %v3468_v7, %v3464_v17 }
0x18be   :  { %3301 = vmatprep.mubr.msk.bf16.mxu0 %vm3587_vm0, %v3586_v0  ;;  %3298 = vmatpush3.bf16.msra.mxu0 %v3395_v9 }
0x18bf   :  { %v2509_v8 = vpack.c.bf16 %v2507_v56, %v2507_v56  ;;  %3299 = vmatprep.subr.bf16.mxu0 %v3586_v0 }
0x18c1   :  { %3294 = vmatmul.mubr.msk.bf16.vlgmr.msra.gmra.mxu1 %vm349_vm3, %v2509_v8 }
0x18c2   :  { %3309 = vmatprep.mubr.msk.bf16.mxu1 %vm3587_vm0, %v3586_v0  ;;  %3300 = vmatpush3.bf16.msra.mxu0 %v3396_v13 }
0x18c3   :  { %3313 = vmatprep.subr.bf16.mxu0 %v3586_v0  ;;  %3306 = vmatpush3.bf16.msra.mxu1 %v3397_v52 }
0x18c4   :  { %3307 = vmatprep.subr.bf16.mxu1 %v3586_v0 }
0x18c7   :  { %3308 = vmatpush3.bf16.msra.mxu1 %v3398_v42 }
0x197d   :  { %v2552_v14 = vpop.f32.mrf.mxu0 }
0x197f   :  { %v3289_v51 = vpop.f32.mrf.mxu0 }
0x1981   :  { %v2555_v15 = vpop.f32.mrf.mxu0  ;;  %v2600_v4 = vpop.f32.mrf.mxu1 }
0x1982   :  { %v3370_v16 = vpack.i.bf16 %v2600_v4, %v2552_v14 }
0x1983   :  { %v3290_v19 = vpop.f32.mrf.mxu0  ;;  %v3295_v20 = vpop.f32.mrf.mxu1 }
0x1984   :  { %3371 = vrot.lane.b32.xlu1 %v3370_v16, %s3592_s25 }
0x1985   :  { %v2603_v50 = vpop.f32.mrf.mxu1 }
0x1987   :  { %v3296_v60 = vpop.f32.mrf.mxu1 }
0x19f6   :  { %v3372_v28 = vpop.permute.xlu1 %3371 }
0x19f7   :  { %v3374_v29 = vunpack.i.h.bf16 %v3372_v28  ;;  %v3373_v32 = vunpack.i.l.bf16 %v3372_v28 }
0x19f9   :  { %v2635_v38 = vsel %vm1253_vm5, %v2633_v35, %v3374_v29  ;;  %v2634_v43 = vsel %vm1253_vm5, %v2632_v33, %v3373_v32 }
0x19fa   :  { %v2636_v47 = vpack.c.bf16 %v2635_v38, %v2634_v43 }
0x19fc   :  { %3302 = vmatmul.mubr.msk.bf16.vlgmr.msra.gmra.mxu0 %vm182_vm2, %v2636_v47 }
0x19fd   :  { %3317 = vmatprep.mubr.msk.bf16.mxu0 %vm3587_vm0, %v3586_v0  ;;  %3314 = vmatpush3.bf16.msra.mxu0 %v3399_v61 }
0x19fe   :  { %3315 = vmatprep.subr.bf16.mxu0 %v3586_v0  ;;  %v2921_v0 = vld [vmem:[%s4160_s5] ss:$0 sm:$0xff] }
0x1a01   :  { %3316 = vmatpush3.bf16.msra.mxu0 %v3400_v62 }
0x1abc   :  { %v2690_v48 = vpop.f32.mrf.mxu0 }
0x1abd   :  { %v2691_v39 = vadd.f32 %v2690_v48, %v2640_v53 }
0x1abe   :  { %v3303_v54 = vpop.f32.mrf.mxu0 }
0x1ac0   :  { %v2693_v11 = vpop.f32.mrf.mxu0 }
0x1ac1   :  { %v2694_v55 = vadd.f32 %v2693_v11, %v2640_v53 }
0x1ac2   :  { %v3304_v58 = vpop.f32.mrf.mxu0 }
0x1ac3   :  { %v2702_v59 = vpack.c.bf16 %v2694_v55, %v2691_v39 }
0x1ac5   :  { %3310 = vmatmul.mubr.msk.bf16.vlgmr.msra.gmra.mxu1 %vm182_vm2, %v2702_v59 }
0x1b85   :  { %v2756_v63 = vpop.f32.mrf.mxu1 }
0x1b86   :  { %v2757_v3 = vadd.f32 %v2756_v63, %v2706_v23 }
0x1b87   :  { %v3311_v1 = vpop.f32.mrf.mxu1 }
0x1b88   :  { %v2763_v17 = vmax.f32 %v2757_v3, 0.0 }
0x1b89   :  { %v2759_v12 = vpop.f32.mrf.mxu1 }
0x1b8a   :  { %v2760_v57 = vadd.f32 %v2759_v12, %v2706_v23 }
0x1b8b   :  { %v3312_v36 = vpop.f32.mrf.mxu1 }
0x1b8c   :  { %v2764_v5 = vmax.f32 %v2760_v57, 0.0 }
0x1b8e   :  { %v2770_v6 = vpack.c.bf16 %v2764_v5, %v2763_v17 }
0x1b90   :  { %3318 = vmatmul.mubr.msk.bf16.vlgmr.msra.gmra.mxu0 %vm182_vm2, %v2770_v6 }
0x1c50   :  { %v2826_v18 = vpop.f32.mrf.mxu0 }
0x1c51   :  { %v2827_v34 = vadd.f32 %v2921_v0, %v2826_v18 }
0x1c52   :  { %v3319_v10 = vpop.f32.mrf.mxu0 }
0x1c53   :  { %2833 = vst [vmem:[#allocation10] sm:$0xff] %v2827_v34 }
0x1c54   :  { %v2829_v30 = vpop.f32.mrf.mxu0 }
0x1c55   :  { %v2830_v31 = vadd.f32 %v2921_v0, %v2829_v30 }
0x1c56   :  { %v3320_v44 = vpop.f32.mrf.mxu0 }
0x1c57   :  { %2834 = vst [vmem:[#allocation10 + $0x8] sm:$0xff] %v2830_v31 }
0x1c58   :  { %3561 = shalt.err (!%p3558_p10)
}
0x1c59   :  { %2846 = dma.vmem_to_hbm [thread:$0]  %s2841_s10, 256, %s4162_s7, [#allocation4], %s3582_s11, %s3582_s11, %s3583_s12  }
0x1c5a   :  { %3576 = dma.done.wait [#allocation4], 256  }
0x1c5b   :  { %3577 = vsyncadd [#allocation4], 4294967040 }
0x1c5c   :  { %2850 = vsyncpa [#allocation3], 1 }
0x1c5d   :  { %2851 = vsyncpa [#allocation6], 1 }
0x1c5e   :  { %2852 = vsyncpa [#allocation9], 1 }
0x1c5f   :  { %2853 = vsyncpa [#allocation4], 1 }

</bundles_post_ra>
